<compile_context>
chip_gen: v7x
topology: tpu7x:2x2x1
jax: 0.10.0
libtpu: 0.0.40
codegen_flags: <defaults>
</compile_context>

<pallas_src>
import functools

import jax
import jax.numpy as jnp
from jax.experimental import pallas as pl
from jax.experimental.pallas import tpu as pltpu


# ----------------------------------------------------------------------------
# Fused kernel: all GIN layers + per-run global_add_pool for every JK output.
#   per run r (rb runs per grid step), per layer l:
#     h_r          = A @ x_r + x_r                    (eps = 0, 'add' aggregation)
#     x_r          = ReLU( ReLU(h_r @ W1'_l + b1'_l) @ W2'_l + b2'_l )  (BN folded)
#     pooled[r, l] = P @ x_r                          (global_add_pool per graph)
# ----------------------------------------------------------------------------
def _dropgin_fused_kernel(num_layers, x_ref, a_ref, p_ref, *refs):
    L = num_layers
    w1_refs = refs[0:L]
    w2_refs = refs[L:2 * L]
    b_refs = refs[2 * L:3 * L]
    pooled_ref = refs[3 * L]

    a = a_ref[...]                       # (N, N)  bf16, resident
    p = p_ref[...]                       # (G, N)  bf16, resident
    rb, n, _ = x_ref.shape

    # per-run activations, kept as a list of (N, C) f32 tiles (avoids in-kernel
    # transposes; each run is an independent small MXU matmul against A)
    xs = [x_ref[r] for r in range(rb)]

    for l in range(L):
        w1 = w1_refs[l][...]             # (Cin, D) bf16 (inner BN folded)
        w2 = w2_refs[l][...]             # (D, D)   bf16 (outer BN folded)
        b1 = b_refs[l][0:1, :]           # (1, D)   f32
        b2 = b_refs[l][1:2, :]           # (1, D)   f32

        # neighbor sum + self term, per run (bf16 MXU inputs, f32 accumulate)
        hs = [jnp.dot(a, xi.astype(jnp.bfloat16),
                      preferred_element_type=jnp.float32) + xi
              for xi in xs]
        hf = jnp.concatenate(hs, axis=0)                      # (rb*N, Cin) f32

        # GIN MLP with folded BatchNorms; runs batched into the MXU M-dimension
        z = jnp.dot(hf.astype(jnp.bfloat16), w1,
                    preferred_element_type=jnp.float32) + b1
        z = jnp.maximum(z, 0.0)
        z = jnp.dot(z.astype(jnp.bfloat16), w2,
                    preferred_element_type=jnp.float32) + b2
        z = jnp.maximum(z, 0.0)                               # (rb*N, D) f32

        xs = [z[r * n:(r + 1) * n] for r in range(rb)]

        # per-run graph pooling for this layer's jumping-knowledge output
        for r in range(rb):
            pooled_ref[r, l] = jnp.dot(p, xs[r].astype(jnp.bfloat16),
                                       preferred_element_type=jnp.float32)


# ----------------------------------------------------------------------------
# BN folding (inference mode)
# ----------------------------------------------------------------------------
def _fold_bn(conv_p, bn_p, eps=1e-5):
    """Fold inference-mode BatchNorms into the GIN MLP weights."""
    s1 = conv_p["bn_g"] * jax.lax.rsqrt(conv_p["bn_v"] + eps)      # (1, D)
    w1 = conv_p["w1"] * s1
    b1 = (conv_p["b1"] - conv_p["bn_m"]) * s1 + conv_p["bn_b"]
    s2 = bn_p["g"] * jax.lax.rsqrt(bn_p["v"] + eps)
    w2 = conv_p["w2"] * s2
    b2 = (conv_p["b2"] - bn_p["m"]) * s2 + bn_p["b"]
    return w1, b1, w2, b2


# ----------------------------------------------------------------------------
# Wrapper: pallas_call plumbing
# ----------------------------------------------------------------------------
def dropgin_layers_pooled(xr, A, P, params, *, max_runs_per_block=8,
                          vmem_limit_bytes=48 * 1024 * 1024):
    """Run all GIN layers; return per-run pooled JK features, shape (R, L, G, D)."""
    R, N, F = xr.shape
    L = len(params["convs"])
    D = params["convs"][0]["w2"].shape[1]
    G = P.shape[0]

    # largest divisor of R not exceeding max_runs_per_block (runs per grid step)
    rb = next(r for r in range(min(R, max_runs_per_block), 0, -1) if R % r == 0)

    a_bf = A.astype(jnp.bfloat16)        # integer edge counts: exact in bf16
    p_bf = P.astype(jnp.bfloat16)        # one-hot membership: exact in bf16

    w1s, w2s, bs = [], [], []
    for l in range(L):
        w1, b1, w2, b2 = _fold_bn(params["convs"][l], params["bns"][l])
        w1s.append(w1.astype(jnp.bfloat16))
        w2s.append(w2.astype(jnp.bfloat16))
        bs.append(jnp.concatenate([b1, b2], axis=0))   # packed (2, D) f32 biases

    def rep(shape):  # resident operand: constant index_map
        nd = len(shape)
        return pl.BlockSpec(shape, lambda i, nd=nd: (0,) * nd)

    in_specs = [pl.BlockSpec((rb, N, F), lambda i: (i, 0, 0)),   # per-run-block feats
                rep((N, N)),                                      # adjacency
                rep((G, N))]                                      # pooling matrix
    in_specs += [rep(w.shape) for w in w1s]
    in_specs += [rep((D, D)) for _ in w2s]
    in_specs += [rep((2, D)) for _ in bs]

    return pl.pallas_call(
        functools.partial(_dropgin_fused_kernel, L),
        out_shape=jax.ShapeDtypeStruct((R, L, G, D), jnp.float32),
        grid=(R // rb,),
        in_specs=in_specs,
        out_specs=pl.BlockSpec((rb, L, G, D), lambda i: (i, 0, 0, 0)),
        compiler_params=pltpu.CompilerParams(
            dimension_semantics=("parallel",),   # run-blocks write disjoint outputs
            vmem_limit_bytes=vmem_limit_bytes),
    )(xr, a_bf, p_bf, *w1s, *w2s, *bs)


# ----------------------------------------------------------------------------
# Pure-JAX reference of the same math (same bf16/f32 mixed precision) for testing
# ----------------------------------------------------------------------------
def reference_layers_pooled(xr, A, P, params):
    R, N, _ = xr.shape
    L = len(params["convs"])
    a = A.astype(jnp.bfloat16)
    p = P.astype(jnp.bfloat16)
    x = xr.astype(jnp.float32)
    pooled = []
    for l in range(L):
        w1, b1, w2, b2 = _fold_bn(params["convs"][l], params["bns"][l])
        w1 = w1.astype(jnp.bfloat16)
        w2 = w2.astype(jnp.bfloat16)
        h = jnp.einsum("nm,rmc->rnc", a, x.astype(jnp.bfloat16),
                       preferred_element_type=jnp.float32) + x
        hf = h.reshape(R * N, -1)
        z = jnp.dot(hf.astype(jnp.bfloat16), w1,
                    preferred_element_type=jnp.float32) + b1
        z = jnp.maximum(z, 0.0)
        z = jnp.dot(z.astype(jnp.bfloat16), w2,
                    preferred_element_type=jnp.float32) + b2
        z = jnp.maximum(z, 0.0)
        x = z.reshape(R, N, -1)
        pooled.append(jnp.einsum("gn,rnd->rgd", p, x.astype(jnp.bfloat16),
                                 preferred_element_type=jnp.float32))
    return jnp.stack(pooled, axis=1)    # (R, L, G, D)


# ----------------------------------------------------------------------------
# Parameter init (deterministic, PyTorch-style uniform fan-in bounds)
# ----------------------------------------------------------------------------
def _linear(key, fan_in, fan_out):
    k1, k2 = jax.random.split(key)
    bound = 1.0 / (fan_in ** 0.5)
    w = jax.random.uniform(k1, (fan_in, fan_out), jnp.float32, -bound, bound)
    b = jax.random.uniform(k2, (1, fan_out), jnp.float32, -bound, bound)
    return w, b


def _bn(d):
    return {"g": jnp.ones((1, d), jnp.float32), "b": jnp.zeros((1, d), jnp.float32),
            "m": jnp.zeros((1, d), jnp.float32), "v": jnp.ones((1, d), jnp.float32)}


def init_params(key, num_features, dim, num_classes, num_layers):
    params = {"convs": [], "bns": [], "fcs": []}
    kidx = 0

    def nk():
        nonlocal kidx
        kidx += 1
        return jax.random.fold_in(key, kidx)

    for i in range(num_layers):
        din = num_features if i == 0 else dim
        w1, b1 = _linear(nk(), din, dim)
        w2, b2 = _linear(nk(), dim, dim)
        bn_in = _bn(dim)
        params["convs"].append({"w1": w1, "b1": b1, "w2": w2, "b2": b2,
                                "bn_g": bn_in["g"], "bn_b": bn_in["b"],
                                "bn_m": bn_in["m"], "bn_v": bn_in["v"]})
        params["bns"].append(_bn(dim))

    # fcs: one on raw features, then one per layer output
    w, b = _linear(nk(), num_features, num_classes)
    params["fcs"].append({"w": w, "b": b})
    for _ in range(num_layers):
        w, b = _linear(nk(), dim, num_classes)
        params["fcs"].append({"w": w, "b": b})
    return params


# ----------------------------------------------------------------------------
# Forward pass (graph_class=True, aggr='add', use_aux_loss=False)
# ----------------------------------------------------------------------------
def dropgin_forward(params, x, edge_index, batch, num_graphs, runs, p, drop_key,
                    use_kernel=True):
    N, F = x.shape
    # per-run node dropout (drop node with probability p, no rescaling)
    drop = jax.random.bernoulli(drop_key, p, (runs, N))
    xr = jnp.where(drop[:, :, None], 0.0,
                   jnp.broadcast_to(x[None], (runs, N, F))).astype(jnp.float32)

    # dense adjacency A[i, j] = #edges j -> i  (PyG target <- source aggregation)
    src, dst = edge_index[0], edge_index[1]
    A = jnp.zeros((N, N), jnp.float32).at[dst, src].add(1.0)

    # graph-pooling matrix (global_add_pool)
    P = jnp.zeros((num_graphs, N), jnp.float32).at[batch, jnp.arange(N)].set(1.0)

    # all GIN layers + per-run pooling -> (R, L, G, D)
    if use_kernel:
        pooled = dropgin_layers_pooled(xr, A, P, params)
    else:
        pooled = reference_layers_pooled(xr, A, P, params)
    pooled_mean = jnp.mean(pooled, axis=0)                         # (L, G, D)

    # jumping-knowledge readout: layer-0 (raw dropped features) + each layer
    mean0 = jnp.mean(xr, axis=0)                                   # (N, F)
    out = jnp.dot(P, mean0) @ params["fcs"][0]["w"] + params["fcs"][0]["b"]
    for i in range(len(params["convs"])):
        out = out + pooled_mean[i] @ params["fcs"][i + 1]["w"] + params["fcs"][i + 1]["b"]

    return jax.nn.log_softmax(out, axis=-1), 0


# ----------------------------------------------------------------------------
if __name__ == "__main__":
    num_features = 8
    num_hidden = 32
    num_classes = 4
    num_layers = 3
    runs = 4
    p = 0.3
    nodes_per_graph = 8
    num_graphs = 2
    N = nodes_per_graph * num_graphs

    key = jax.random.PRNGKey(0)
    k_x, k_params, k_drop = jax.random.split(key, 3)

    # node features
    x = jax.random.normal(k_x, (N, num_features), jnp.float32)

    # two bidirectional ring graphs of 8 nodes each
    def ring_edges(n, offset):
        s = jnp.arange(n) + offset
        d = (jnp.arange(n) + 1) % n + offset
        return jnp.concatenate([jnp.stack([s, d]), jnp.stack([d, s])], axis=1)

    edge_index = jnp.concatenate(
        [ring_edges(nodes_per_graph, 0), ring_edges(nodes_per_graph, nodes_per_graph)],
        axis=1).astype(jnp.int32)                                  # (2, 32)
    batch = jnp.concatenate(
        [jnp.zeros(nodes_per_graph, jnp.int32),
         jnp.ones(nodes_per_graph, jnp.int32)])                    # (16,)

    params = init_params(k_params, num_features, num_hidden, num_classes, num_layers)

    log_probs, aux = dropgin_forward(
        params, x, edge_index, batch, num_graphs, runs, p, k_drop, use_kernel=True)
    log_probs = jax.block_until_ready(log_probs)

    # pure-JAX reference of the same (bf16-matmul, folded-BN) math
    ref_log_probs, _ = dropgin_forward(
        params, x, edge_index, batch, num_graphs, runs, p, k_drop, use_kernel=False)
    ref_log_probs = jax.block_until_ready(ref_log_probs)

    assert log_probs.shape == (num_graphs, num_classes)
    assert bool(jnp.all(jnp.isfinite(log_probs)))
    assert bool(jnp.allclose(log_probs, ref_log_probs, atol=1e-2, rtol=1e-2)), (
        log_probs, ref_log_probs)
    print("KERNEL_OK")
</pallas_src>

<mosaic_0001>
module attributes {stable_mosaic.version = 11 : i64} {
  func.func @_dropgin_fused_kernel(%arg0: i32, %arg1: memref<4x16x8xf32, #tpu.memory_space<vmem>>, %arg2: memref<16x16xbf16, #tpu.memory_space<vmem>>, %arg3: memref<2x16xbf16, #tpu.memory_space<vmem>>, %arg4: memref<8x32xbf16, #tpu.memory_space<vmem>>, %arg5: memref<32x32xbf16, #tpu.memory_space<vmem>>, %arg6: memref<32x32xbf16, #tpu.memory_space<vmem>>, %arg7: memref<32x32xbf16, #tpu.memory_space<vmem>>, %arg8: memref<32x32xbf16, #tpu.memory_space<vmem>>, %arg9: memref<32x32xbf16, #tpu.memory_space<vmem>>, %arg10: memref<2x32xf32, #tpu.memory_space<vmem>>, %arg11: memref<2x32xf32, #tpu.memory_space<vmem>>, %arg12: memref<2x32xf32, #tpu.memory_space<vmem>>, %arg13: memref<4x3x2x32xf32, #tpu.memory_space<vmem>>) attributes {dimension_semantics = [#tpu.dimension_semantics<parallel>], iteration_bounds = array<i64: 1>, scalar_prefetch = 0 : i64, scratch_operands = 0 : i64, tpu.core_type = #tpu.core_type<tc>, window_params = [{transform_indices = @transform_0, window_bounds = array<i64: 4, 16, 8>}, {pipeline_mode = #tpu.pipeline_mode<synchronous>, transform_indices = @transform_1, window_bounds = array<i64: 16, 16>}, {pipeline_mode = #tpu.pipeline_mode<synchronous>, transform_indices = @transform_2, window_bounds = array<i64: 2, 16>}, {pipeline_mode = #tpu.pipeline_mode<synchronous>, transform_indices = @transform_3, window_bounds = array<i64: 8, 32>}, {pipeline_mode = #tpu.pipeline_mode<synchronous>, transform_indices = @transform_4, window_bounds = array<i64: 32, 32>}, {pipeline_mode = #tpu.pipeline_mode<synchronous>, transform_indices = @transform_5, window_bounds = array<i64: 32, 32>}, {pipeline_mode = #tpu.pipeline_mode<synchronous>, transform_indices = @transform_6, window_bounds = array<i64: 32, 32>}, {pipeline_mode = #tpu.pipeline_mode<synchronous>, transform_indices = @transform_7, window_bounds = array<i64: 32, 32>}, {pipeline_mode = #tpu.pipeline_mode<synchronous>, transform_indices = @transform_8, window_bounds = array<i64: 32, 32>}, {pipeline_mode = #tpu.pipeline_mode<synchronous>, transform_indices = @transform_9, window_bounds = array<i64: 2, 32>}, {pipeline_mode = #tpu.pipeline_mode<synchronous>, transform_indices = @transform_10, window_bounds = array<i64: 2, 32>}, {pipeline_mode = #tpu.pipeline_mode<synchronous>, transform_indices = @transform_11, window_bounds = array<i64: 2, 32>}, {transform_indices = @transform_12, window_bounds = array<i64: 4, 3, 2, 32>}]} {
    %c0 = arith.constant 0 : index
    %c0_0 = arith.constant 0 : index
    %0 = vector.load %arg2[%c0, %c0_0] : memref<16x16xbf16, #tpu.memory_space<vmem>>, vector<16x16xbf16>
    %c0_1 = arith.constant 0 : index
    %c0_2 = arith.constant 0 : index
    %1 = vector.load %arg3[%c0_1, %c0_2] : memref<2x16xbf16, #tpu.memory_space<vmem>>, vector<2x16xbf16>
    %c0_3 = arith.constant 0 : index
    %c0_4 = arith.constant 0 : index
    %c0_5 = arith.constant 0 : index
    %2 = vector.load %arg1[%c0_3, %c0_4, %c0_5] : memref<4x16x8xf32, #tpu.memory_space<vmem>>, vector<1x16x8xf32>
    %3 = vector.shape_cast %2 : vector<1x16x8xf32> to vector<16x8xf32>
    %c1 = arith.constant 1 : index
    %c0_6 = arith.constant 0 : index
    %c0_7 = arith.constant 0 : index
    %4 = vector.load %arg1[%c1, %c0_6, %c0_7] : memref<4x16x8xf32, #tpu.memory_space<vmem>>, vector<1x16x8xf32>
    %5 = vector.shape_cast %4 : vector<1x16x8xf32> to vector<16x8xf32>
    %c2 = arith.constant 2 : index
    %c0_8 = arith.constant 0 : index
    %c0_9 = arith.constant 0 : index
    %6 = vector.load %arg1[%c2, %c0_8, %c0_9] : memref<4x16x8xf32, #tpu.memory_space<vmem>>, vector<1x16x8xf32>
    %7 = vector.shape_cast %6 : vector<1x16x8xf32> to vector<16x8xf32>
    %c3 = arith.constant 3 : index
    %c0_10 = arith.constant 0 : index
    %c0_11 = arith.constant 0 : index
    %8 = vector.load %arg1[%c3, %c0_10, %c0_11] : memref<4x16x8xf32, #tpu.memory_space<vmem>>, vector<1x16x8xf32>
    %9 = vector.shape_cast %8 : vector<1x16x8xf32> to vector<16x8xf32>
    %c0_12 = arith.constant 0 : index
    %c0_13 = arith.constant 0 : index
    %10 = vector.load %arg4[%c0_12, %c0_13] : memref<8x32xbf16, #tpu.memory_space<vmem>>, vector<8x32xbf16>
    %c0_14 = arith.constant 0 : index
    %c0_15 = arith.constant 0 : index
    %11 = vector.load %arg7[%c0_14, %c0_15] : memref<32x32xbf16, #tpu.memory_space<vmem>>, vector<32x32xbf16>
    %c0_16 = arith.constant 0 : index
    %c0_17 = arith.constant 0 : index
    %12 = vector.load %arg10[%c0_16, %c0_17] : memref<2x32xf32, #tpu.memory_space<vmem>>, vector<1x32xf32>
    %c1_18 = arith.constant 1 : index
    %c0_19 = arith.constant 0 : index
    %13 = vector.load %arg10[%c1_18, %c0_19] : memref<2x32xf32, #tpu.memory_space<vmem>>, vector<1x32xf32>
    %14 = arith.truncf %3 : vector<16x8xf32> to vector<16x8xbf16>
    %cst = arith.constant dense<0.000000e+00> : vector<16x8xf32>
    %15 = tpu.matmul %0, %14, %cst {dimension_numbers = #tpu.dot_dimension_numbers<[1], [0], [0], [1], [0, 0, 1, 1], [], []>} : vector<16x16xbf16>, vector<16x8xbf16>, vector<16x8xf32> -> vector<16x8xf32>
    %16 = arith.addf %15, %3 : vector<16x8xf32>
    %17 = arith.truncf %5 : vector<16x8xf32> to vector<16x8xbf16>
    %cst_20 = arith.constant dense<0.000000e+00> : vector<16x8xf32>
    %18 = tpu.matmul %0, %17, %cst_20 {dimension_numbers = #tpu.dot_dimension_numbers<[1], [0], [0], [1], [0, 0, 1, 1], [], []>} : vector<16x16xbf16>, vector<16x8xbf16>, vector<16x8xf32> -> vector<16x8xf32>
    %19 = arith.addf %18, %5 : vector<16x8xf32>
    %20 = arith.truncf %7 : vector<16x8xf32> to vector<16x8xbf16>
    %cst_21 = arith.constant dense<0.000000e+00> : vector<16x8xf32>
    %21 = tpu.matmul %0, %20, %cst_21 {dimension_numbers = #tpu.dot_dimension_numbers<[1], [0], [0], [1], [0, 0, 1, 1], [], []>} : vector<16x16xbf16>, vector<16x8xbf16>, vector<16x8xf32> -> vector<16x8xf32>
    %22 = arith.addf %21, %7 : vector<16x8xf32>
    %23 = arith.truncf %9 : vector<16x8xf32> to vector<16x8xbf16>
    %cst_22 = arith.constant dense<0.000000e+00> : vector<16x8xf32>
    %24 = tpu.matmul %0, %23, %cst_22 {dimension_numbers = #tpu.dot_dimension_numbers<[1], [0], [0], [1], [0, 0, 1, 1], [], []>} : vector<16x16xbf16>, vector<16x8xbf16>, vector<16x8xf32> -> vector<16x8xf32>
    %25 = arith.addf %24, %9 : vector<16x8xf32>
    %26 = tpu.concatenate %16, %19, %22, %25 in 0 : vector<16x8xf32>, vector<16x8xf32>, vector<16x8xf32>, vector<16x8xf32> -> vector<64x8xf32>
    %27 = arith.truncf %26 : vector<64x8xf32> to vector<64x8xbf16>
    %cst_23 = arith.constant dense<0.000000e+00> : vector<64x32xf32>
    %28 = tpu.matmul %27, %10, %cst_23 {dimension_numbers = #tpu.dot_dimension_numbers<[1], [0], [0], [1], [0, 0, 1, 1], [], []>} : vector<64x8xbf16>, vector<8x32xbf16>, vector<64x32xf32> -> vector<64x32xf32>
    %29 = vector.broadcast %12 : vector<1x32xf32> to vector<64x32xf32>
    %30 = arith.addf %28, %29 : vector<64x32xf32>
    %cst_24 = arith.constant 0.000000e+00 : f32
    %31 = vector.broadcast %cst_24 : f32 to vector<64x32xf32>
    %32 = arith.maximumf %30, %31 : vector<64x32xf32>
    %33 = arith.truncf %32 : vector<64x32xf32> to vector<64x32xbf16>
    %cst_25 = arith.constant dense<0.000000e+00> : vector<64x32xf32>
    %34 = tpu.matmul %33, %11, %cst_25 {dimension_numbers = #tpu.dot_dimension_numbers<[1], [0], [0], [1], [0, 0, 1, 1], [], []>} : vector<64x32xbf16>, vector<32x32xbf16>, vector<64x32xf32> -> vector<64x32xf32>
    %35 = vector.broadcast %13 : vector<1x32xf32> to vector<64x32xf32>
    %36 = arith.addf %34, %35 : vector<64x32xf32>
    %cst_26 = arith.constant 0.000000e+00 : f32
    %37 = vector.broadcast %cst_26 : f32 to vector<64x32xf32>
    %38 = arith.maximumf %36, %37 : vector<64x32xf32>
    %39 = vector.extract_strided_slice %38 {offsets = [0, 0], sizes = [16, 32], strides = [1, 1]} : vector<64x32xf32> to vector<16x32xf32>
    %40 = vector.extract_strided_slice %38 {offsets = [16, 0], sizes = [16, 32], strides = [1, 1]} : vector<64x32xf32> to vector<16x32xf32>
    %41 = vector.extract_strided_slice %38 {offsets = [32, 0], sizes = [16, 32], strides = [1, 1]} : vector<64x32xf32> to vector<16x32xf32>
    %42 = vector.extract_strided_slice %38 {offsets = [48, 0], sizes = [16, 32], strides = [1, 1]} : vector<64x32xf32> to vector<16x32xf32>
    %43 = arith.truncf %39 : vector<16x32xf32> to vector<16x32xbf16>
    %cst_27 = arith.constant dense<0.000000e+00> : vector<2x32xf32>
    %44 = tpu.matmul %1, %43, %cst_27 {dimension_numbers = #tpu.dot_dimension_numbers<[1], [0], [0], [1], [0, 0, 1, 1], [], []>} : vector<2x16xbf16>, vector<16x32xbf16>, vector<2x32xf32> -> vector<2x32xf32>
    %c0_28 = arith.constant 0 : index
    %c0_29 = arith.constant 0 : index
    %c0_30 = arith.constant 0 : index
    %c0_31 = arith.constant 0 : index
    %45 = vector.load %arg13[%c0_28, %c0_29, %c0_30, %c0_31] : memref<4x3x2x32xf32, #tpu.memory_space<vmem>>, vector<1x1x2x32xf32>
    %46 = vector.shape_cast %45 : vector<1x1x2x32xf32> to vector<2x32xf32>
    %47 = vector.shape_cast %44 : vector<2x32xf32> to vector<1x1x2x32xf32>
    tpu.vector_store %arg13[%c0_28, %c0_29, %c0_30, %c0_31], %47 {strides = array<i32>} : memref<4x3x2x32xf32, #tpu.memory_space<vmem>>, vector<1x1x2x32xf32>,
    %48 = arith.truncf %40 : vector<16x32xf32> to vector<16x32xbf16>
    %cst_32 = arith.constant dense<0.000000e+00> : vector<2x32xf32>
    %49 = tpu.matmul %1, %48, %cst_32 {dimension_numbers = #tpu.dot_dimension_numbers<[1], [0], [0], [1], [0, 0, 1, 1], [], []>} : vector<2x16xbf16>, vector<16x32xbf16>, vector<2x32xf32> -> vector<2x32xf32>
    %c1_33 = arith.constant 1 : index
    %c0_34 = arith.constant 0 : index
    %c0_35 = arith.constant 0 : index
    %c0_36 = arith.constant 0 : index
    %50 = vector.load %arg13[%c1_33, %c0_34, %c0_35, %c0_36] : memref<4x3x2x32xf32, #tpu.memory_space<vmem>>, vector<1x1x2x32xf32>
    %51 = vector.shape_cast %50 : vector<1x1x2x32xf32> to vector<2x32xf32>
    %52 = vector.shape_cast %49 : vector<2x32xf32> to vector<1x1x2x32xf32>
    tpu.vector_store %arg13[%c1_33, %c0_34, %c0_35, %c0_36], %52 {strides = array<i32>} : memref<4x3x2x32xf32, #tpu.memory_space<vmem>>, vector<1x1x2x32xf32>,
    %53 = arith.truncf %41 : vector<16x32xf32> to vector<16x32xbf16>
    %cst_37 = arith.constant dense<0.000000e+00> : vector<2x32xf32>
    %54 = tpu.matmul %1, %53, %cst_37 {dimension_numbers = #tpu.dot_dimension_numbers<[1], [0], [0], [1], [0, 0, 1, 1], [], []>} : vector<2x16xbf16>, vector<16x32xbf16>, vector<2x32xf32> -> vector<2x32xf32>
    %c2_38 = arith.constant 2 : index
    %c0_39 = arith.constant 0 : index
    %c0_40 = arith.constant 0 : index
    %c0_41 = arith.constant 0 : index
    %55 = vector.load %arg13[%c2_38, %c0_39, %c0_40, %c0_41] : memref<4x3x2x32xf32, #tpu.memory_space<vmem>>, vector<1x1x2x32xf32>
    %56 = vector.shape_cast %55 : vector<1x1x2x32xf32> to vector<2x32xf32>
    %57 = vector.shape_cast %54 : vector<2x32xf32> to vector<1x1x2x32xf32>
    tpu.vector_store %arg13[%c2_38, %c0_39, %c0_40, %c0_41], %57 {strides = array<i32>} : memref<4x3x2x32xf32, #tpu.memory_space<vmem>>, vector<1x1x2x32xf32>,
    %58 = arith.truncf %42 : vector<16x32xf32> to vector<16x32xbf16>
    %cst_42 = arith.constant dense<0.000000e+00> : vector<2x32xf32>
    %59 = tpu.matmul %1, %58, %cst_42 {dimension_numbers = #tpu.dot_dimension_numbers<[1], [0], [0], [1], [0, 0, 1, 1], [], []>} : vector<2x16xbf16>, vector<16x32xbf16>, vector<2x32xf32> -> vector<2x32xf32>
    %c3_43 = arith.constant 3 : index
    %c0_44 = arith.constant 0 : index
    %c0_45 = arith.constant 0 : index
    %c0_46 = arith.constant 0 : index
    %60 = vector.load %arg13[%c3_43, %c0_44, %c0_45, %c0_46] : memref<4x3x2x32xf32, #tpu.memory_space<vmem>>, vector<1x1x2x32xf32>
    %61 = vector.shape_cast %60 : vector<1x1x2x32xf32> to vector<2x32xf32>
    %62 = vector.shape_cast %59 : vector<2x32xf32> to vector<1x1x2x32xf32>
    tpu.vector_store %arg13[%c3_43, %c0_44, %c0_45, %c0_46], %62 {strides = array<i32>} : memref<4x3x2x32xf32, #tpu.memory_space<vmem>>, vector<1x1x2x32xf32>,
    %c0_47 = arith.constant 0 : index
    %c0_48 = arith.constant 0 : index
    %63 = vector.load %arg5[%c0_47, %c0_48] : memref<32x32xbf16, #tpu.memory_space<vmem>>, vector<32x32xbf16>
    %c0_49 = arith.constant 0 : index
    %c0_50 = arith.constant 0 : index
    %64 = vector.load %arg8[%c0_49, %c0_50] : memref<32x32xbf16, #tpu.memory_space<vmem>>, vector<32x32xbf16>
    %c0_51 = arith.constant 0 : index
    %c0_52 = arith.constant 0 : index
    %65 = vector.load %arg11[%c0_51, %c0_52] : memref<2x32xf32, #tpu.memory_space<vmem>>, vector<1x32xf32>
    %c1_53 = arith.constant 1 : index
    %c0_54 = arith.constant 0 : index
    %66 = vector.load %arg11[%c1_53, %c0_54] : memref<2x32xf32, #tpu.memory_space<vmem>>, vector<1x32xf32>
    %67 = arith.truncf %39 : vector<16x32xf32> to vector<16x32xbf16>
    %cst_55 = arith.constant dense<0.000000e+00> : vector<16x32xf32>
    %68 = tpu.matmul %0, %67, %cst_55 {dimension_numbers = #tpu.dot_dimension_numbers<[1], [0], [0], [1], [0, 0, 1, 1], [], []>} : vector<16x16xbf16>, vector<16x32xbf16>, vector<16x32xf32> -> vector<16x32xf32>
    %69 = arith.addf %68, %39 : vector<16x32xf32>
    %70 = arith.truncf %40 : vector<16x32xf32> to vector<16x32xbf16>
    %cst_56 = arith.constant dense<0.000000e+00> : vector<16x32xf32>
    %71 = tpu.matmul %0, %70, %cst_56 {dimension_numbers = #tpu.dot_dimension_numbers<[1], [0], [0], [1], [0, 0, 1, 1], [], []>} : vector<16x16xbf16>, vector<16x32xbf16>, vector<16x32xf32> -> vector<16x32xf32>
    %72 = arith.addf %71, %40 : vector<16x32xf32>
    %73 = arith.truncf %41 : vector<16x32xf32> to vector<16x32xbf16>
    %cst_57 = arith.constant dense<0.000000e+00> : vector<16x32xf32>
    %74 = tpu.matmul %0, %73, %cst_57 {dimension_numbers = #tpu.dot_dimension_numbers<[1], [0], [0], [1], [0, 0, 1, 1], [], []>} : vector<16x16xbf16>, vector<16x32xbf16>, vector<16x32xf32> -> vector<16x32xf32>
    %75 = arith.addf %74, %41 : vector<16x32xf32>
    %76 = arith.truncf %42 : vector<16x32xf32> to vector<16x32xbf16>
    %cst_58 = arith.constant dense<0.000000e+00> : vector<16x32xf32>
    %77 = tpu.matmul %0, %76, %cst_58 {dimension_numbers = #tpu.dot_dimension_numbers<[1], [0], [0], [1], [0, 0, 1, 1], [], []>} : vector<16x16xbf16>, vector<16x32xbf16>, vector<16x32xf32> -> vector<16x32xf32>
    %78 = arith.addf %77, %42 : vector<16x32xf32>
    %79 = tpu.concatenate %69, %72, %75, %78 in 0 : vector<16x32xf32>, vector<16x32xf32>, vector<16x32xf32>, vector<16x32xf32> -> vector<64x32xf32>
    %80 = arith.truncf %79 : vector<64x32xf32> to vector<64x32xbf16>
    %cst_59 = arith.constant dense<0.000000e+00> : vector<64x32xf32>
    %81 = tpu.matmul %80, %63, %cst_59 {dimension_numbers = #tpu.dot_dimension_numbers<[1], [0], [0], [1], [0, 0, 1, 1], [], []>} : vector<64x32xbf16>, vector<32x32xbf16>, vector<64x32xf32> -> vector<64x32xf32>
    %82 = vector.broadcast %65 : vector<1x32xf32> to vector<64x32xf32>
    %83 = arith.addf %81, %82 : vector<64x32xf32>
    %cst_60 = arith.constant 0.000000e+00 : f32
    %84 = vector.broadcast %cst_60 : f32 to vector<64x32xf32>
    %85 = arith.maximumf %83, %84 : vector<64x32xf32>
    %86 = arith.truncf %85 : vector<64x32xf32> to vector<64x32xbf16>
    %cst_61 = arith.constant dense<0.000000e+00> : vector<64x32xf32>
    %87 = tpu.matmul %86, %64, %cst_61 {dimension_numbers = #tpu.dot_dimension_numbers<[1], [0], [0], [1], [0, 0, 1, 1], [], []>} : vector<64x32xbf16>, vector<32x32xbf16>, vector<64x32xf32> -> vector<64x32xf32>
    %88 = vector.broadcast %66 : vector<1x32xf32> to vector<64x32xf32>
    %89 = arith.addf %87, %88 : vector<64x32xf32>
    %cst_62 = arith.constant 0.000000e+00 : f32
    %90 = vector.broadcast %cst_62 : f32 to vector<64x32xf32>
    %91 = arith.maximumf %89, %90 : vector<64x32xf32>
    %92 = vector.extract_strided_slice %91 {offsets = [0, 0], sizes = [16, 32], strides = [1, 1]} : vector<64x32xf32> to vector<16x32xf32>
    %93 = vector.extract_strided_slice %91 {offsets = [16, 0], sizes = [16, 32], strides = [1, 1]} : vector<64x32xf32> to vector<16x32xf32>
    %94 = vector.extract_strided_slice %91 {offsets = [32, 0], sizes = [16, 32], strides = [1, 1]} : vector<64x32xf32> to vector<16x32xf32>
    %95 = vector.extract_strided_slice %91 {offsets = [48, 0], sizes = [16, 32], strides = [1, 1]} : vector<64x32xf32> to vector<16x32xf32>
    %96 = arith.truncf %92 : vector<16x32xf32> to vector<16x32xbf16>
    %cst_63 = arith.constant dense<0.000000e+00> : vector<2x32xf32>
    %97 = tpu.matmul %1, %96, %cst_63 {dimension_numbers = #tpu.dot_dimension_numbers<[1], [0], [0], [1], [0, 0, 1, 1], [], []>} : vector<2x16xbf16>, vector<16x32xbf16>, vector<2x32xf32> -> vector<2x32xf32>
    %c0_64 = arith.constant 0 : index
    %c1_65 = arith.constant 1 : index
    %c0_66 = arith.constant 0 : index
    %c0_67 = arith.constant 0 : index
    %98 = vector.load %arg13[%c0_64, %c1_65, %c0_66, %c0_67] : memref<4x3x2x32xf32, #tpu.memory_space<vmem>>, vector<1x1x2x32xf32>
    %99 = vector.shape_cast %98 : vector<1x1x2x32xf32> to vector<2x32xf32>
    %100 = vector.shape_cast %97 : vector<2x32xf32> to vector<1x1x2x32xf32>
    tpu.vector_store %arg13[%c0_64, %c1_65, %c0_66, %c0_67], %100 {strides = array<i32>} : memref<4x3x2x32xf32, #tpu.memory_space<vmem>>, vector<1x1x2x32xf32>,
    %101 = arith.truncf %93 : vector<16x32xf32> to vector<16x32xbf16>
    %cst_68 = arith.constant dense<0.000000e+00> : vector<2x32xf32>
    %102 = tpu.matmul %1, %101, %cst_68 {dimension_numbers = #tpu.dot_dimension_numbers<[1], [0], [0], [1], [0, 0, 1, 1], [], []>} : vector<2x16xbf16>, vector<16x32xbf16>, vector<2x32xf32> -> vector<2x32xf32>
    %c1_69 = arith.constant 1 : index
    %c1_70 = arith.constant 1 : index
    %c0_71 = arith.constant 0 : index
    %c0_72 = arith.constant 0 : index
    %103 = vector.load %arg13[%c1_69, %c1_70, %c0_71, %c0_72] : memref<4x3x2x32xf32, #tpu.memory_space<vmem>>, vector<1x1x2x32xf32>
    %104 = vector.shape_cast %103 : vector<1x1x2x32xf32> to vector<2x32xf32>
    %105 = vector.shape_cast %102 : vector<2x32xf32> to vector<1x1x2x32xf32>
    tpu.vector_store %arg13[%c1_69, %c1_70, %c0_71, %c0_72], %105 {strides = array<i32>} : memref<4x3x2x32xf32, #tpu.memory_space<vmem>>, vector<1x1x2x32xf32>,
    %106 = arith.truncf %94 : vector<16x32xf32> to vector<16x32xbf16>
    %cst_73 = arith.constant dense<0.000000e+00> : vector<2x32xf32>
    %107 = tpu.matmul %1, %106, %cst_73 {dimension_numbers = #tpu.dot_dimension_numbers<[1], [0], [0], [1], [0, 0, 1, 1], [], []>} : vector<2x16xbf16>, vector<16x32xbf16>, vector<2x32xf32> -> vector<2x32xf32>
    %c2_74 = arith.constant 2 : index
    %c1_75 = arith.constant 1 : index
    %c0_76 = arith.constant 0 : index
    %c0_77 = arith.constant 0 : index
    %108 = vector.load %arg13[%c2_74, %c1_75, %c0_76, %c0_77] : memref<4x3x2x32xf32, #tpu.memory_space<vmem>>, vector<1x1x2x32xf32>
    %109 = vector.shape_cast %108 : vector<1x1x2x32xf32> to vector<2x32xf32>
    %110 = vector.shape_cast %107 : vector<2x32xf32> to vector<1x1x2x32xf32>
    tpu.vector_store %arg13[%c2_74, %c1_75, %c0_76, %c0_77], %110 {strides = array<i32>} : memref<4x3x2x32xf32, #tpu.memory_space<vmem>>, vector<1x1x2x32xf32>,
    %111 = arith.truncf %95 : vector<16x32xf32> to vector<16x32xbf16>
    %cst_78 = arith.constant dense<0.000000e+00> : vector<2x32xf32>
    %112 = tpu.matmul %1, %111, %cst_78 {dimension_numbers = #tpu.dot_dimension_numbers<[1], [0], [0], [1], [0, 0, 1, 1], [], []>} : vector<2x16xbf16>, vector<16x32xbf16>, vector<2x32xf32> -> vector<2x32xf32>
    %c3_79 = arith.constant 3 : index
    %c1_80 = arith.constant 1 : index
    %c0_81 = arith.constant 0 : index
    %c0_82 = arith.constant 0 : index
    %113 = vector.load %arg13[%c3_79, %c1_80, %c0_81, %c0_82] : memref<4x3x2x32xf32, #tpu.memory_space<vmem>>, vector<1x1x2x32xf32>
    %114 = vector.shape_cast %113 : vector<1x1x2x32xf32> to vector<2x32xf32>
    %115 = vector.shape_cast %112 : vector<2x32xf32> to vector<1x1x2x32xf32>
    tpu.vector_store %arg13[%c3_79, %c1_80, %c0_81, %c0_82], %115 {strides = array<i32>} : memref<4x3x2x32xf32, #tpu.memory_space<vmem>>, vector<1x1x2x32xf32>,
    %c0_83 = arith.constant 0 : index
    %c0_84 = arith.constant 0 : index
    %116 = vector.load %arg6[%c0_83, %c0_84] : memref<32x32xbf16, #tpu.memory_space<vmem>>, vector<32x32xbf16>
    %c0_85 = arith.constant 0 : index
    %c0_86 = arith.constant 0 : index
    %117 = vector.load %arg9[%c0_85, %c0_86] : memref<32x32xbf16, #tpu.memory_space<vmem>>, vector<32x32xbf16>
    %c0_87 = arith.constant 0 : index
    %c0_88 = arith.constant 0 : index
    %118 = vector.load %arg12[%c0_87, %c0_88] : memref<2x32xf32, #tpu.memory_space<vmem>>, vector<1x32xf32>
    %c1_89 = arith.constant 1 : index
    %c0_90 = arith.constant 0 : index
    %119 = vector.load %arg12[%c1_89, %c0_90] : memref<2x32xf32, #tpu.memory_space<vmem>>, vector<1x32xf32>
    %120 = arith.truncf %92 : vector<16x32xf32> to vector<16x32xbf16>
    %cst_91 = arith.constant dense<0.000000e+00> : vector<16x32xf32>
    %121 = tpu.matmul %0, %120, %cst_91 {dimension_numbers = #tpu.dot_dimension_numbers<[1], [0], [0], [1], [0, 0, 1, 1], [], []>} : vector<16x16xbf16>, vector<16x32xbf16>, vector<16x32xf32> -> vector<16x32xf32>
    %122 = arith.addf %121, %92 : vector<16x32xf32>
    %123 = arith.truncf %93 : vector<16x32xf32> to vector<16x32xbf16>
    %cst_92 = arith.constant dense<0.000000e+00> : vector<16x32xf32>
    %124 = tpu.matmul %0, %123, %cst_92 {dimension_numbers = #tpu.dot_dimension_numbers<[1], [0], [0], [1], [0, 0, 1, 1], [], []>} : vector<16x16xbf16>, vector<16x32xbf16>, vector<16x32xf32> -> vector<16x32xf32>
    %125 = arith.addf %124, %93 : vector<16x32xf32>
    %126 = arith.truncf %94 : vector<16x32xf32> to vector<16x32xbf16>
    %cst_93 = arith.constant dense<0.000000e+00> : vector<16x32xf32>
    %127 = tpu.matmul %0, %126, %cst_93 {dimension_numbers = #tpu.dot_dimension_numbers<[1], [0], [0], [1], [0, 0, 1, 1], [], []>} : vector<16x16xbf16>, vector<16x32xbf16>, vector<16x32xf32> -> vector<16x32xf32>
    %128 = arith.addf %127, %94 : vector<16x32xf32>
    %129 = arith.truncf %95 : vector<16x32xf32> to vector<16x32xbf16>
    %cst_94 = arith.constant dense<0.000000e+00> : vector<16x32xf32>
    %130 = tpu.matmul %0, %129, %cst_94 {dimension_numbers = #tpu.dot_dimension_numbers<[1], [0], [0], [1], [0, 0, 1, 1], [], []>} : vector<16x16xbf16>, vector<16x32xbf16>, vector<16x32xf32> -> vector<16x32xf32>
    %131 = arith.addf %130, %95 : vector<16x32xf32>
    %132 = tpu.concatenate %122, %125, %128, %131 in 0 : vector<16x32xf32>, vector<16x32xf32>, vector<16x32xf32>, vector<16x32xf32> -> vector<64x32xf32>
    %133 = arith.truncf %132 : vector<64x32xf32> to vector<64x32xbf16>
    %cst_95 = arith.constant dense<0.000000e+00> : vector<64x32xf32>
    %134 = tpu.matmul %133, %116, %cst_95 {dimension_numbers = #tpu.dot_dimension_numbers<[1], [0], [0], [1], [0, 0, 1, 1], [], []>} : vector<64x32xbf16>, vector<32x32xbf16>, vector<64x32xf32> -> vector<64x32xf32>
    %135 = vector.broadcast %118 : vector<1x32xf32> to vector<64x32xf32>
    %136 = arith.addf %134, %135 : vector<64x32xf32>
    %cst_96 = arith.constant 0.000000e+00 : f32
    %137 = vector.broadcast %cst_96 : f32 to vector<64x32xf32>
    %138 = arith.maximumf %136, %137 : vector<64x32xf32>
    %139 = arith.truncf %138 : vector<64x32xf32> to vector<64x32xbf16>
    %cst_97 = arith.constant dense<0.000000e+00> : vector<64x32xf32>
    %140 = tpu.matmul %139, %117, %cst_97 {dimension_numbers = #tpu.dot_dimension_numbers<[1], [0], [0], [1], [0, 0, 1, 1], [], []>} : vector<64x32xbf16>, vector<32x32xbf16>, vector<64x32xf32> -> vector<64x32xf32>
    %141 = vector.broadcast %119 : vector<1x32xf32> to vector<64x32xf32>
    %142 = arith.addf %140, %141 : vector<64x32xf32>
    %cst_98 = arith.constant 0.000000e+00 : f32
    %143 = vector.broadcast %cst_98 : f32 to vector<64x32xf32>
    %144 = arith.maximumf %142, %143 : vector<64x32xf32>
    %145 = vector.extract_strided_slice %144 {offsets = [0, 0], sizes = [16, 32], strides = [1, 1]} : vector<64x32xf32> to vector<16x32xf32>
    %146 = vector.extract_strided_slice %144 {offsets = [16, 0], sizes = [16, 32], strides = [1, 1]} : vector<64x32xf32> to vector<16x32xf32>
    %147 = vector.extract_strided_slice %144 {offsets = [32, 0], sizes = [16, 32], strides = [1, 1]} : vector<64x32xf32> to vector<16x32xf32>
    %148 = vector.extract_strided_slice %144 {offsets = [48, 0], sizes = [16, 32], strides = [1, 1]} : vector<64x32xf32> to vector<16x32xf32>
    %149 = arith.truncf %145 : vector<16x32xf32> to vector<16x32xbf16>
    %cst_99 = arith.constant dense<0.000000e+00> : vector<2x32xf32>
    %150 = tpu.matmul %1, %149, %cst_99 {dimension_numbers = #tpu.dot_dimension_numbers<[1], [0], [0], [1], [0, 0, 1, 1], [], []>} : vector<2x16xbf16>, vector<16x32xbf16>, vector<2x32xf32> -> vector<2x32xf32>
    %c0_100 = arith.constant 0 : index
    %c2_101 = arith.constant 2 : index
    %c0_102 = arith.constant 0 : index
    %c0_103 = arith.constant 0 : index
    %151 = vector.load %arg13[%c0_100, %c2_101, %c0_102, %c0_103] : memref<4x3x2x32xf32, #tpu.memory_space<vmem>>, vector<1x1x2x32xf32>
    %152 = vector.shape_cast %151 : vector<1x1x2x32xf32> to vector<2x32xf32>
    %153 = vector.shape_cast %150 : vector<2x32xf32> to vector<1x1x2x32xf32>
    tpu.vector_store %arg13[%c0_100, %c2_101, %c0_102, %c0_103], %153 {strides = array<i32>} : memref<4x3x2x32xf32, #tpu.memory_space<vmem>>, vector<1x1x2x32xf32>,
    %154 = arith.truncf %146 : vector<16x32xf32> to vector<16x32xbf16>
    %cst_104 = arith.constant dense<0.000000e+00> : vector<2x32xf32>
    %155 = tpu.matmul %1, %154, %cst_104 {dimension_numbers = #tpu.dot_dimension_numbers<[1], [0], [0], [1], [0, 0, 1, 1], [], []>} : vector<2x16xbf16>, vector<16x32xbf16>, vector<2x32xf32> -> vector<2x32xf32>
    %c1_105 = arith.constant 1 : index
    %c2_106 = arith.constant 2 : index
    %c0_107 = arith.constant 0 : index
    %c0_108 = arith.constant 0 : index
    %156 = vector.load %arg13[%c1_105, %c2_106, %c0_107, %c0_108] : memref<4x3x2x32xf32, #tpu.memory_space<vmem>>, vector<1x1x2x32xf32>
    %157 = vector.shape_cast %156 : vector<1x1x2x32xf32> to vector<2x32xf32>
    %158 = vector.shape_cast %155 : vector<2x32xf32> to vector<1x1x2x32xf32>
    tpu.vector_store %arg13[%c1_105, %c2_106, %c0_107, %c0_108], %158 {strides = array<i32>} : memref<4x3x2x32xf32, #tpu.memory_space<vmem>>, vector<1x1x2x32xf32>,
    %159 = arith.truncf %147 : vector<16x32xf32> to vector<16x32xbf16>
    %cst_109 = arith.constant dense<0.000000e+00> : vector<2x32xf32>
    %160 = tpu.matmul %1, %159, %cst_109 {dimension_numbers = #tpu.dot_dimension_numbers<[1], [0], [0], [1], [0, 0, 1, 1], [], []>} : vector<2x16xbf16>, vector<16x32xbf16>, vector<2x32xf32> -> vector<2x32xf32>
    %c2_110 = arith.constant 2 : index
    %c2_111 = arith.constant 2 : index
    %c0_112 = arith.constant 0 : index
    %c0_113 = arith.constant 0 : index
    %161 = vector.load %arg13[%c2_110, %c2_111, %c0_112, %c0_113] : memref<4x3x2x32xf32, #tpu.memory_space<vmem>>, vector<1x1x2x32xf32>
    %162 = vector.shape_cast %161 : vector<1x1x2x32xf32> to vector<2x32xf32>
    %163 = vector.shape_cast %160 : vector<2x32xf32> to vector<1x1x2x32xf32>
    tpu.vector_store %arg13[%c2_110, %c2_111, %c0_112, %c0_113], %163 {strides = array<i32>} : memref<4x3x2x32xf32, #tpu.memory_space<vmem>>, vector<1x1x2x32xf32>,
    %164 = arith.truncf %148 : vector<16x32xf32> to vector<16x32xbf16>
    %cst_114 = arith.constant dense<0.000000e+00> : vector<2x32xf32>
    %165 = tpu.matmul %1, %164, %cst_114 {dimension_numbers = #tpu.dot_dimension_numbers<[1], [0], [0], [1], [0, 0, 1, 1], [], []>} : vector<2x16xbf16>, vector<16x32xbf16>, vector<2x32xf32> -> vector<2x32xf32>
    %c3_115 = arith.constant 3 : index
    %c2_116 = arith.constant 2 : index
    %c0_117 = arith.constant 0 : index
    %c0_118 = arith.constant 0 : index
    %166 = vector.load %arg13[%c3_115, %c2_116, %c0_117, %c0_118] : memref<4x3x2x32xf32, #tpu.memory_space<vmem>>, vector<1x1x2x32xf32>
    %167 = vector.shape_cast %166 : vector<1x1x2x32xf32> to vector<2x32xf32>
    %168 = vector.shape_cast %165 : vector<2x32xf32> to vector<1x1x2x32xf32>
    tpu.vector_store %arg13[%c3_115, %c2_116, %c0_117, %c0_118], %168 {strides = array<i32>} : memref<4x3x2x32xf32, #tpu.memory_space<vmem>>, vector<1x1x2x32xf32>,
    return
  }
  func.func @transform_0(%arg0: i32) -> (i32, i32, i32) {
    %c0_i32 = arith.constant 0 : i32
    %c0_i32_0 = arith.constant 0 : i32
    %c0_i32_1 = arith.constant 0 : i32
    return %arg0, %c0_i32, %c0_i32_0 : i32, i32, i32
  }
  func.func @transform_1(%arg0: i32) -> (i32, i32) {
    %c0_i32 = arith.constant 0 : i32
    %c0_i32_0 = arith.constant 0 : i32
    %c0_i32_1 = arith.constant 0 : i32
    return %c0_i32, %c0_i32_0 : i32, i32
  }
  func.func @transform_2(%arg0: i32) -> (i32, i32) {
    %c0_i32 = arith.constant 0 : i32
    %c0_i32_0 = arith.constant 0 : i32
    %c0_i32_1 = arith.constant 0 : i32
    return %c0_i32, %c0_i32_0 : i32, i32
  }
  func.func @transform_3(%arg0: i32) -> (i32, i32) {
    %c0_i32 = arith.constant 0 : i32
    %c0_i32_0 = arith.constant 0 : i32
    %c0_i32_1 = arith.constant 0 : i32
    return %c0_i32, %c0_i32_0 : i32, i32
  }
  func.func @transform_4(%arg0: i32) -> (i32, i32) {
    %c0_i32 = arith.constant 0 : i32
    %c0_i32_0 = arith.constant 0 : i32
    %c0_i32_1 = arith.constant 0 : i32
    return %c0_i32, %c0_i32_0 : i32, i32
  }
  func.func @transform_5(%arg0: i32) -> (i32, i32) {
    %c0_i32 = arith.constant 0 : i32
    %c0_i32_0 = arith.constant 0 : i32
    %c0_i32_1 = arith.constant 0 : i32
    return %c0_i32, %c0_i32_0 : i32, i32
  }
  func.func @transform_6(%arg0: i32) -> (i32, i32) {
    %c0_i32 = arith.constant 0 : i32
    %c0_i32_0 = arith.constant 0 : i32
    %c0_i32_1 = arith.constant 0 : i32
    return %c0_i32, %c0_i32_0 : i32, i32
  }
  func.func @transform_7(%arg0: i32) -> (i32, i32) {
    %c0_i32 = arith.constant 0 : i32
    %c0_i32_0 = arith.constant 0 : i32
    %c0_i32_1 = arith.constant 0 : i32
    return %c0_i32, %c0_i32_0 : i32, i32
  }
  func.func @transform_8(%arg0: i32) -> (i32, i32) {
    %c0_i32 = arith.constant 0 : i32
    %c0_i32_0 = arith.constant 0 : i32
    %c0_i32_1 = arith.constant 0 : i32
    return %c0_i32, %c0_i32_0 : i32, i32
  }
  func.func @transform_9(%arg0: i32) -> (i32, i32) {
    %c0_i32 = arith.constant 0 : i32
    %c0_i32_0 = arith.constant 0 : i32
    %c0_i32_1 = arith.constant 0 : i32
    return %c0_i32, %c0_i32_0 : i32, i32
  }
  func.func @transform_10(%arg0: i32) -> (i32, i32) {
    %c0_i32 = arith.constant 0 : i32
    %c0_i32_0 = arith.constant 0 : i32
    %c0_i32_1 = arith.constant 0 : i32
    return %c0_i32, %c0_i32_0 : i32, i32
  }
  func.func @transform_11(%arg0: i32) -> (i32, i32) {
    %c0_i32 = arith.constant 0 : i32
    %c0_i32_0 = arith.constant 0 : i32
    %c0_i32_1 = arith.constant 0 : i32
    return %c0_i32, %c0_i32_0 : i32, i32
  }
  func.func @transform_12(%arg0: i32) -> (i32, i32, i32, i32) {
    %c0_i32 = arith.constant 0 : i32
    %c0_i32_0 = arith.constant 0 : i32
    %c0_i32_1 = arith.constant 0 : i32
    %c0_i32_2 = arith.constant 0 : i32
    return %arg0, %c0_i32, %c0_i32_0, %c0_i32_1 : i32, i32, i32, i32
  }
}

</mosaic_0001>

<bundles_post_ra>
// kernel: tpu_custom_call.1
= control target key start
LH: loop header
LB: loop body
LE: loop exit
PB: predicated region body
PF: predicated region fallthrough
CT: control target
= control target key end

     0   :  { %v2157_v3 = vmov 0.0   ;;  %vm2158_vm0 = vmmov 0   ;;  %vm70_vm1 = vcmask 130048   ;;  %s2592_s0 = inlined_call_operand.vmem [shape: f32[4,16,8], index: 0, kind: input, shape index: {}]   ;;  %s2593_s1 = inlined_call_operand.vmem [shape: bf16[16,16], index: 1, kind: input, shape index: {}]   ;;  %s2594_s2 = inlined_call_operand.vmem [shape: bf16[2,16], index: 2, kind: input, shape index: {}]   ;;  %s2595_s3 = inlined_call_operand.vmem [shape: bf16[8,32], index: 3, kind: input, shape index: {}]   ;;  %s2596_s4 = inlined_call_operand.vmem [shape: bf16[32,32], index: 4, kind: input, shape index: {}]   ;;  %s2597_s5 = inlined_call_operand.vmem [shape: bf16[32,32], index: 5, kind: input, shape index: {}]   ;;  %s2598_s6 = inlined_call_operand.vmem [shape: bf16[32,32], index: 6, kind: input, shape index: {}]   ;;  %s2599_s7 = inlined_call_operand.vmem [shape: bf16[32,32], index: 7, kind: input, shape index: {}]   ;;  %s2600_s8 = inlined_call_operand.vmem [shape: bf16[32,32], index: 8, kind: input, shape index: {}]   ;;  %s2601_s9 = inlined_call_operand.vmem [shape: f32[2,32], index: 9, kind: input, shape index: {}]   ;;  %s2602_s10 = inlined_call_operand.vmem [shape: f32[2,32], index: 10, kind: input, shape index: {}]   ;;  %s2603_s11 = inlined_call_operand.vmem [shape: f32[2,32], index: 11, kind: input, shape index: {}]   ;;  %s2604_s12 = inlined_call_operand.hbm [shape: f32[4,3,2,32], index: 12, kind: output, shape index: {}]  }
   0x1   :  { %v46_v0 = vld [vmem:[%s2592_s0] sm:$0xff]  ;;  %v47_v1 = vld [vmem:[%s2592_s0 + $0x8] sm:$0xff]  ;;  %v1748_v2 = vld [vmem:[%s2592_s0 + $0x10] sm:$0xff]  ;;  %1902 = vmatprep.subr.bf16.mxu0 %v2157_v3  ;;  %1908 = vmatprep.subr.bf16.mxu1 %v2157_v3 }
   0x2   :  { %v64_v4 = vpack.c.bf16 %v47_v1, %v46_v0  ;;  %v1749_v5 = vld [vmem:[%s2592_s0 + $0x18] sm:$0xff]  ;;  %1904 = vmatprep.mubr.msk.bf16.mxu0 %vm2158_vm0, %v2157_v3  ;;  %1910 = vmatprep.mubr.msk.bf16.mxu1 %vm2158_vm0, %v2157_v3  ;;  %v2248_v7 = vld [vmem:[%s2593_s1] sm:$0xff]   ;;  %v1751_v9 = vld [vmem:[%s2592_s0 + $0x28] sm:$0xff] }
   0x3   :  { %v115_v6 = vpack.c.bf16 %v1749_v5, %v1748_v2  ;;  %v1750_v8 = vld [vmem:[%s2592_s0 + $0x20] sm:$0xff]  ;;  %v1752_v11 = vld [vmem:[%s2592_s0 + $0x30] sm:$0xff]  ;;  %v1753_v12 = vld [vmem:[%s2592_s0 + $0x38] sm:$0xff] }
   0x4   :  { %1903 = vmatpush3.bf16.msra.mxu0 %v64_v4  ;;  %v157_v10 = vpack.c.bf16 %v1751_v9, %v1750_v8  ;;  %v199_v13 = vpack.c.bf16 %v1753_v12, %v1752_v11 }
   0x5   :  { %1909 = vmatpush3.bf16.msra.mxu1 %v115_v6  ;;  %1914 = vmatprep.subr.bf16.mxu0 %v2157_v3 }
   0x6   :  { %1920 = vmatprep.subr.bf16.mxu1 %v2157_v3 }
   0x7   :  { %1905 = vmatmul.mubr.msk.bf16.vlgmr.msra.gmra.mrb[0].mxu0 %vm70_vm1, %v2248_v7 }
   0x8   :  { %1911 = vmatmul.mubr.msk.bf16.vlgmr.msra.gmra.mrb[0].mxu1 %vm70_vm1, %v2248_v7  ;;  %1915 = vmatpush3.bf16.msra.mxu0 %v157_v10 }
   0x9   :  { %1921 = vmatpush3.bf16.msra.mxu1 %v199_v13  ;;  %1916 = vmatprep.mubr.msk.bf16.mxu0 %vm2158_vm0, %v2157_v3 }
   0xa   :  { %1922 = vmatprep.mubr.msk.bf16.mxu1 %vm2158_vm0, %v2157_v3 }
   0xb   :  { %17 = vsyncpa [#allocation3], 0  ;;  %v57_v14 = vld [vmem:[%s2595_s3] sm:$0xf]  ;;  %vm262_vm2 = vcmask 1043456   ;;  %vm249_vm3 = vcmask 64512  }
   0xc   :  { %2116 = vmatprep.subr.msk.bf16.mxu0 %vm262_vm2, %v57_v14  ;;  %v264_v15 = vsel %vm262_vm2, %v57_v14, 0  ;;  %v2123_v44 = vld [vmem:[%s2598_s6] sm:$0xff]   ;;  %v2124_v45 = vld [vmem:[%s2598_s6 + $0x8] sm:$0xff]   ;;  %vm359_vm4 = vcmask 261120   ;;  %vm489_vm5 = vcmask 254976  }
   0xd   :  { %1936 = vmatprep.subr.bf16.mxu1 %v2123_v44  ;;  %v1759_v46 = vld [vmem:[%s2601_s9] ss:$0 sm:$0xff]  ;;  %v1764_v13 = vld [vmem:[%s2601_s9 + $0x1] ss:$0 sm:$0xff] }
   0xf   :  { %1917 = vmatmul.mubr.msk.bf16.vlgmr.msra.gmra.mrb[4].mxu0 %vm70_vm1, %v2248_v7 }
  0x10   :  { %1923 = vmatmul.mubr.msk.bf16.vlgmr.msra.gmra.mrb[4].mxu1 %vm70_vm1, %v2248_v7  ;;  %1927 = vmatpush3.bf16.msra.mxu0 %v264_v15 }
  0x11   :  { %1948 = vmatprep.subr.bf16.mxu0 %v2157_v3  ;;  %1937 = vmatpush3.bf16.msra.mxu1 %v2123_v44  ;;  %v2126_v44 = vld [vmem:[%s2596_s4 + $0x8] sm:$0xff]  }
  0x12   :  { %1938 = vmatprep.subr.bf16.mxu1 %v2124_v45 }
  0x15   :  { %1939 = vmatpush3.bf16.msra.mxu1 %v2124_v45 }
  0x16   :  { %1954 = vmatprep.subr.bf16.mxu1 %v2157_v3 }
  0xda   :  { %v108_v16 = vpop.f32.mrb[0].mxu0 }
  0xdb   :  { %v150_v17 = vpop.f32.mrb[0].mxu1  ;;  %v1906_v18 = vpop.f32.mrb[1].mxu0  ;;  %v109_v22 = vadd.f32 %v108_v16, %v46_v0 }
  0xdc   :  { %v151_v19 = vadd.f32 %v1748_v2, %v150_v17  ;;  %v1912_v20 = vpop.f32.mrb[1].mxu1  ;;  %v111_v21 = vpop.f32.mrb[2].mxu0 }
  0xdd   :  { %v112_v23 = vadd.f32 %v111_v21, %v47_v1  ;;  %v153_v24 = vpop.f32.mrb[2].mxu1  ;;  %v1907_v25 = vpop.f32.mrb[3].mxu0 }
  0xde   :  { %v154_v26 = vadd.f32 %v1749_v5, %v153_v24  ;;  %v1913_v27 = vpop.f32.mrb[3].mxu1 }
  0xdf   :  { %v241_v28 = vpack.c.bf16 %v112_v23, %v109_v22 }
  0xe0   :  { %v242_v29 = vpack.c.bf16 %v154_v26, %v151_v19 }
  0xe1   :  { %1928 = vmatprep.mubr.msk.bf16.mxu0 %vm249_vm3, %v241_v28 }
  0xe2   :  { %v192_v30 = vpop.f32.mrb[4].mxu0  ;;  %1929 = vmatmul.mubr.msk.bf16.vlgmr.msra.gmra.mrb[8].mxu0 %vm249_vm3, %v242_v29 }
  0xe3   :  { %v234_v31 = vpop.f32.mrb[4].mxu1  ;;  %v1918_v32 = vpop.f32.mrb[5].mxu0  ;;  %v193_v36 = vadd.f32 %v1750_v8, %v192_v30 }
  0xe4   :  { %v235_v33 = vadd.f32 %v1752_v11, %v234_v31  ;;  %v1924_v34 = vpop.f32.mrb[5].mxu1  ;;  %v195_v35 = vpop.f32.mrb[6].mxu0  ;;  %v2330_v31 = vld [vmem:[%s2594_s2] sm:$0x1] }
  0xe5   :  { %v196_v37 = vadd.f32 %v1751_v9, %v195_v35  ;;  %v237_v38 = vpop.f32.mrb[6].mxu1  ;;  %v1919_v39 = vpop.f32.mrb[7].mxu0 }
  0xe6   :  { %v238_v40 = vadd.f32 %v1753_v12, %v237_v38  ;;  %v1925_v41 = vpop.f32.mrb[7].mxu1 }
  0xe7   :  { %v243_v42 = vpack.c.bf16 %v196_v37, %v193_v36 }
  0xe8   :  { %v244_v43 = vpack.c.bf16 %v238_v40, %v235_v33 }
  0xe9   :  { %1932 = vmatprep.mubr.msk.bf16.mxu0 %vm249_vm3, %v243_v42 }
  0xea   :  { %1933 = vmatmul.mubr.msk.bf16.gmra.mrb[12].mxu0 %vm249_vm3, %v244_v43  ;;  %v2125_v43 = vld [vmem:[%s2596_s4] sm:$0xff]  }
  0xeb   :  { %1950 = vmatprep.mubr.msk.bf16.mxu0 %vm2158_vm0, %v2157_v3 }
 0x1b5   :  { %v1930_v47 = vpop.f32.mrb[8].mxu0 }
 0x1b6   :  { %v309_v48 = vadd.f32 %v1930_v47, %v1759_v46  ;;  %v300_v49 = vpop.f32.mrb[9].mxu0 }
 0x1b7   :  { %v301_v50 = vadd.f32 %v1759_v46, %v300_v49  ;;  %v1931_v51 = vpop.f32.mrb[10].mxu0 }
 0x1b8   :  { %v312_v52 = vadd.f32 %v1931_v51, %v1759_v46  ;;  %v303_v53 = vpop.f32.mrb[11].mxu0  ;;  %v333_v55 = vmax.f32 %v309_v48, 0.0 }
 0x1b9   :  { %v304_v54 = vadd.f32 %v1759_v46, %v303_v53  ;;  %v331_v57 = vmax.f32 %v301_v50, 0.0 }
 0x1ba   :  { %v334_v56 = vmax.f32 %v312_v52, 0.0 }
 0x1bb   :  { %v332_v58 = vmax.f32 %v304_v54, 0.0 }
 0x1bc   :  { %v340_v59 = vpack.c.bf16 %v334_v56, %v333_v55 }
 0x1bd   :  { %v339_v60 = vpack.c.bf16 %v332_v58, %v331_v57  ;;  %v1934_v61 = vpop.f32.mrb[12].mxu0 }
 0x1be   :  { %v325_v62 = vadd.f32 %v1934_v61, %v1759_v46  ;;  %v316_v63 = vpop.f32.mrb[13].mxu0 }
 0x1bf   :  { %v317_v0 = vadd.f32 %v1759_v46, %v316_v63  ;;  %v1935_v1 = vpop.f32.mrb[14].mxu0  ;;  %1940 = vmatprep.mubr.msk.bf16.mxu1 %vm359_vm4, %v339_v60 }
 0x1c0   :  { %v328_v2 = vadd.f32 %v1935_v1, %v1759_v46  ;;  %v319_v4 = vpop.f32.mrb[15].mxu0  ;;  %1941 = vmatmul.mubr.msk.bf16.vlgmr.msra.gmra.mrb[8].mxu1 %vm359_vm4, %v340_v59  ;;  %v337_v6 = vmax.f32 %v325_v62, 0.0 }
 0x1c1   :  { %v320_v5 = vadd.f32 %v1759_v46, %v319_v4  ;;  %v335_v9 = vmax.f32 %v317_v0, 0.0 }
 0x1c2   :  { %v338_v8 = vmax.f32 %v328_v2, 0.0 }
 0x1c3   :  { %v336_v10 = vmax.f32 %v320_v5, 0.0 }
 0x1c4   :  { %v342_v11 = vpack.c.bf16 %v338_v8, %v337_v6 }
 0x1c5   :  { %v341_v12 = vpack.c.bf16 %v336_v10, %v335_v9 }
 0x1c7   :  { %1944 = vmatprep.mubr.msk.bf16.mxu1 %vm359_vm4, %v341_v12 }
 0x1c8   :  { %1945 = vmatmul.mubr.msk.bf16.gmra.mrb[12].mxu1 %vm359_vm4, %v342_v11 }
 0x1c9   :  { %1956 = vmatprep.mubr.msk.bf16.mxu1 %vm2158_vm0, %v2157_v3 }
 0x293   :  { %v1942_v14 = vpop.f32.mrb[8].mxu1 }
 0x294   :  { %v2305_v15 = vadd.f32 %v1942_v14, %v1764_v13  ;;  %v406_v16 = vpop.f32.mrb[9].mxu1 }
 0x295   :  { %v2307_v17 = vadd.f32 %v1764_v13, %v406_v16  ;;  %v1943_v18 = vpop.f32.mrb[10].mxu1 }
 0x296   :  { %v2309_v19 = vadd.f32 %v1943_v18, %v1764_v13  ;;  %v409_v20 = vpop.f32.mrb[11].mxu1  ;;  %v439_v22 = vmax.f32 %v2305_v15, 0.0 }
 0x297   :  { %v2311_v21 = vadd.f32 %v1764_v13, %v409_v20  ;;  %v437_v24 = vmax.f32 %v2307_v17, 0.0 }
 0x298   :  { %v440_v23 = vmax.f32 %v2309_v19, 0.0 }
 0x299   :  { %v438_v25 = vmax.f32 %v2311_v21, 0.0 }
 0x29a   :  { %v491_v26 = vpack.c.bf16 %v440_v23, %v439_v22 }
 0x29b   :  { %v445_v27 = vpack.c.bf16 %v438_v25, %v437_v24  ;;  %v1946_v28 = vpop.f32.mrb[12].mxu1 }
 0x29c   :  { %v2325_v29 = vadd.f32 %v1946_v28, %v1764_v13  ;;  %v422_v30 = vpop.f32.mrb[13].mxu1  ;;  %1955 = vmatpush3.bf16.msra.mxu1 %v491_v26  ;;  %v2128_v28 = vld [vmem:[%s2599_s7 + $0x8] sm:$0xff]  }
 0x29d   :  { %v2332_v32 = vadd.f32 %v1764_v13, %v422_v30  ;;  %v1947_v33 = vpop.f32.mrb[14].mxu1  ;;  %1949 = vmatpush3.bf16.msra.mxu0 %v445_v27  ;;  %1966 = vmatprep.subr.bf16.mxu1 %v2157_v3 }
 0x29e   :  { %v2335_v34 = vadd.f32 %v1947_v33, %v1764_v13  ;;  %v425_v35 = vpop.f32.mrb[15].mxu1  ;;  %1960 = vmatprep.subr.bf16.mxu0 %v2157_v3  ;;  %v443_v37 = vmax.f32 %v2325_v29, 0.0  ;;  %v1779_v29 = vld [vmem:[%s2602_s10] ss:$0 sm:$0xff] }
 0x29f   :  { %v2338_v36 = vadd.f32 %v1764_v13, %v425_v35  ;;  %1957 = vmatmul.mubr.msk.bf16.vlgmr.msra.gmra.mrb[16].mxu1 %vm70_vm1, %v2330_v31  ;;  %v441_v39 = vmax.f32 %v2332_v32, 0.0 }
 0x2a0   :  { %v444_v38 = vmax.f32 %v2335_v34, 0.0  ;;  %1951 = vmatmul.mubr.msk.bf16.vlgmr.msra.gmra.mrb[16].mxu0 %vm70_vm1, %v2330_v31  ;;  %1968 = vmatprep.mubr.msk.bf16.mxu1 %vm2158_vm0, %v2157_v3 }
 0x2a1   :  { %v442_v40 = vmax.f32 %v2338_v36, 0.0  ;;  %1962 = vmatprep.mubr.msk.bf16.mxu0 %vm2158_vm0, %v2157_v3 }
 0x2a2   :  { %v577_v41 = vpack.c.bf16 %v444_v38, %v443_v37 }
 0x2a3   :  { %v534_v42 = vpack.c.bf16 %v442_v40, %v441_v39 }
 0x2a4   :  { %1967 = vmatpush3.bf16.msra.mxu1 %v577_v41 }
 0x2a5   :  { %1961 = vmatpush3.bf16.msra.mxu0 %v534_v42  ;;  %1978 = vmatprep.subr.bf16.mxu1 %v2157_v3 }
 0x2a6   :  { %1972 = vmatprep.subr.bf16.mxu0 %v2157_v3 }
 0x2a7   :  { %1969 = vmatmul.mubr.msk.bf16.vlgmr.msra.gmra.mrb[20].mxu1 %vm70_vm1, %v2330_v31 }
 0x2a8   :  { %1963 = vmatmul.mubr.msk.bf16.vlgmr.msra.gmra.mrb[20].mxu0 %vm70_vm1, %v2330_v31  ;;  %1979 = vmatpush3.bf16.msra.mxu1 %v491_v26 }
 0x2a9   :  { %1973 = vmatpush3.bf16.msra.mxu0 %v445_v27  ;;  %1980 = vmatprep.mubr.msk.bf16.mxu1 %vm2158_vm0, %v2157_v3  ;;  %v2127_v27 = vld [vmem:[%s2599_s7] sm:$0xff]  }
 0x2aa   :  { %1990 = vmatprep.subr.bf16.mxu1 %v2157_v3  ;;  %1974 = vmatprep.mubr.msk.bf16.mxu0 %vm2158_vm0, %v2157_v3 }
 0x2ab   :  { %1984 = vmatprep.subr.bf16.mxu0 %v2157_v3 }
 0x2af   :  { %1981 = vmatmul.mubr.msk.bf16.vlgmr.msra.gmra.mrb[24].mxu1 %vm70_vm1, %v2248_v7 }
 0x2b0   :  { %1991 = vmatpush3.bf16.msra.mxu1 %v577_v41  ;;  %1975 = vmatmul.mubr.msk.bf16.vlgmr.msra.gmra.mrb[24].mxu0 %vm70_vm1, %v2248_v7 }
 0x2b1   :  { %1985 = vmatpush3.bf16.msra.mxu0 %v534_v42  ;;  %1992 = vmatprep.mubr.msk.bf16.mxu1 %vm2158_vm0, %v2157_v3 }
 0x2b2   :  { %1986 = vmatprep.mubr.msk.bf16.mxu0 %vm2158_vm0, %v2157_v3  ;;  %1996 = vmatprep.subr.bf16.mxu0 %v2125_v43 }
 0x2b3   :  { %2008 = vmatprep.subr.bf16.mxu1 %v2127_v27 }
 0x2b7   :  { %1993 = vmatmul.mubr.msk.bf16.vlgmr.msra.gmra.mrb[28].mxu1 %vm70_vm1, %v2248_v7 }
 0x2b8   :  { %1987 = vmatmul.mubr.msk.bf16.vlgmr.msra.gmra.mrb[28].mxu0 %vm70_vm1, %v2248_v7  ;;  %2009 = vmatpush3.bf16.msra.mxu1 %v2127_v27  ;;  %v2130_v27 = vld [vmem:[%s2597_s5 + $0x8] sm:$0xff]  }
 0x2b9   :  { %1997 = vmatpush3.bf16.msra.mxu0 %v2125_v43  ;;  %2010 = vmatprep.subr.bf16.mxu1 %v2128_v28 }
 0x2ba   :  { %1998 = vmatprep.subr.bf16.mxu0 %v2126_v44 }
 0x2bc   :  { %2011 = vmatpush3.bf16.msra.mxu1 %v2128_v28 }
 0x2bd   :  { %1999 = vmatpush3.bf16.msra.mxu0 %v2126_v44  ;;  %2026 = vmatprep.subr.bf16.mxu1 %v2157_v3 }
 0x2be   :  { %2020 = vmatprep.subr.bf16.mxu0 %v2157_v3 }
 0x372   :  { %v526_v45 = vpop.f32.mrb[16].mxu1 }
 0x373   :  { %533 = vst.msk [vmem:[#allocation2 + $0x6] sm:$0x3] %vm489_vm5, %v526_v45  ;;  %v483_v46 = vpop.f32.mrb[16].mxu0  ;;  %v1958_v47 = vpop.f32.mrb[17].mxu1 }
 0x374   :  { %490 = vst.msk [vmem:[#allocation2] sm:$0x3] %vm489_vm5, %v483_v46  ;;  %v1952_v48 = vpop.f32.mrb[17].mxu0  ;;  %v529_v49 = vpop.f32.mrb[18].mxu1 }
 0x375   :  { %v486_v50 = vpop.f32.mrb[18].mxu0  ;;  %v1959_v51 = vpop.f32.mrb[19].mxu1 }
 0x376   :  { %v1953_v52 = vpop.f32.mrb[19].mxu0 }
 0x37a   :  { %v612_v53 = vpop.f32.mrb[20].mxu1 }
 0x37b   :  { %619 = vst.msk [vmem:[#allocation2 + $0x12] sm:$0x3] %vm489_vm5, %v612_v53  ;;  %v569_v54 = vpop.f32.mrb[20].mxu0  ;;  %v1970_v55 = vpop.f32.mrb[21].mxu1 }
 0x37c   :  { %576 = vst.msk [vmem:[#allocation2 + $0xc] sm:$0x3] %vm489_vm5, %v569_v54  ;;  %v1964_v56 = vpop.f32.mrb[21].mxu0  ;;  %v615_v57 = vpop.f32.mrb[22].mxu1 }
 0x37d   :  { %v572_v58 = vpop.f32.mrb[22].mxu0  ;;  %v1971_v59 = vpop.f32.mrb[23].mxu1 }
 0x37e   :  { %v1965_v60 = vpop.f32.mrb[23].mxu0  ;;  %v1786_v59 = vld [vmem:[%s2602_s10 + $0x1] ss:$0 sm:$0xff] }
 0x382   :  { %v705_v61 = vpop.f32.mrb[24].mxu1 }
 0x383   :  { %v664_v62 = vpop.f32.mrb[24].mxu0  ;;  %v1982_v63 = vpop.f32.mrb[25].mxu1  ;;  %v706_v2 = vadd.f32 %v705_v61, %v439_v22 }
 0x384   :  { %v1976_v0 = vpop.f32.mrb[25].mxu0  ;;  %v708_v1 = vpop.f32.mrb[26].mxu1  ;;  %v665_v8 = vadd.f32 %v664_v62, %v437_v24 }
 0x385   :  { %v709_v4 = vadd.f32 %v708_v1, %v440_v23  ;;  %v667_v5 = vpop.f32.mrb[26].mxu0  ;;  %v1983_v6 = vpop.f32.mrb[27].mxu1 }
 0x386   :  { %v668_v9 = vadd.f32 %v667_v5, %v438_v25  ;;  %v1977_v10 = vpop.f32.mrb[27].mxu0 }
 0x387   :  { %v795_v11 = vpack.c.bf16 %v709_v4, %v706_v2 }
 0x388   :  { %v794_v12 = vpack.c.bf16 %v668_v9, %v665_v8 }
 0x38a   :  { %v787_v13 = vpop.f32.mrb[28].mxu1  ;;  %2000 = vmatprep.mubr.msk.bf16.mxu0 %vm359_vm4, %v794_v12 }
 0x38b   :  { %v746_v14 = vpop.f32.mrb[28].mxu0  ;;  %v1994_v15 = vpop.f32.mrb[29].mxu1  ;;  %2001 = vmatmul.mubr.msk.bf16.vlgmr.msra.gmra.mrb[32].mxu0 %vm359_vm4, %v795_v11  ;;  %v788_v19 = vadd.f32 %v787_v13, %v443_v37 }
 0x38c   :  { %v1988_v16 = vpop.f32.mrb[29].mxu0  ;;  %v790_v18 = vpop.f32.mrb[30].mxu1  ;;  %v747_v22 = vadd.f32 %v746_v14, %v441_v39 }
 0x38d   :  { %v791_v17 = vadd.f32 %v790_v18, %v444_v38  ;;  %v749_v20 = vpop.f32.mrb[30].mxu0  ;;  %v1995_v21 = vpop.f32.mrb[31].mxu1 }
 0x38e   :  { %v750_v23 = vadd.f32 %v749_v20, %v442_v40  ;;  %v1989_v24 = vpop.f32.mrb[31].mxu0 }
 0x38f   :  { %v797_v25 = vpack.c.bf16 %v791_v17, %v788_v19 }
 0x390   :  { %v796_v26 = vpack.c.bf16 %v750_v23, %v747_v22 }
 0x392   :  { %2004 = vmatprep.mubr.msk.bf16.mxu0 %vm359_vm4, %v796_v26  ;;  %v2129_v26 = vld [vmem:[%s2597_s5] sm:$0xff]  }
 0x393   :  { %2005 = vmatmul.mubr.msk.bf16.gmra.mrb[36].mxu0 %vm359_vm4, %v797_v25 }
 0x394   :  { %2022 = vmatprep.mubr.msk.bf16.mxu0 %vm2158_vm0, %v2157_v3 }
 0x45e   :  { %v2002_v30 = vpop.f32.mrb[32].mxu0 }
 0x45f   :  { %v869_v32 = vadd.f32 %v2002_v30, %v1779_v29  ;;  %v860_v33 = vpop.f32.mrb[33].mxu0 }
 0x460   :  { %v861_v34 = vadd.f32 %v1779_v29, %v860_v33  ;;  %v2003_v35 = vpop.f32.mrb[34].mxu0 }
 0x461   :  { %v872_v36 = vadd.f32 %v2003_v35, %v1779_v29  ;;  %v863_v37 = vpop.f32.mrb[35].mxu0  ;;  %v893_v39 = vmax.f32 %v869_v32, 0.0 }
 0x462   :  { %v864_v38 = vadd.f32 %v1779_v29, %v863_v37  ;;  %v891_v41 = vmax.f32 %v861_v34, 0.0 }
 0x463   :  { %v894_v40 = vmax.f32 %v872_v36, 0.0 }
 0x464   :  { %v892_v42 = vmax.f32 %v864_v38, 0.0 }
 0x465   :  { %v900_v43 = vpack.c.bf16 %v894_v40, %v893_v39 }
 0x466   :  { %v899_v44 = vpack.c.bf16 %v892_v42, %v891_v41  ;;  %v2006_v45 = vpop.f32.mrb[36].mxu0 }
 0x467   :  { %v885_v46 = vadd.f32 %v2006_v45, %v1779_v29  ;;  %v876_v47 = vpop.f32.mrb[37].mxu0 }
 0x468   :  { %v877_v48 = vadd.f32 %v1779_v29, %v876_v47  ;;  %v2007_v49 = vpop.f32.mrb[38].mxu0  ;;  %2012 = vmatprep.mubr.msk.bf16.mxu1 %vm359_vm4, %v899_v44 }
 0x469   :  { %v888_v50 = vadd.f32 %v2007_v49, %v1779_v29  ;;  %v879_v51 = vpop.f32.mrb[39].mxu0  ;;  %2013 = vmatmul.mubr.msk.bf16.vlgmr.msra.gmra.mrb[32].mxu1 %vm359_vm4, %v900_v43  ;;  %v897_v53 = vmax.f32 %v885_v46, 0.0 }
 0x46a   :  { %v880_v52 = vadd.f32 %v1779_v29, %v879_v51  ;;  %v895_v55 = vmax.f32 %v877_v48, 0.0 }
 0x46b   :  { %v898_v54 = vmax.f32 %v888_v50, 0.0 }
 0x46c   :  { %v896_v56 = vmax.f32 %v880_v52, 0.0 }
 0x46d   :  { %v902_v57 = vpack.c.bf16 %v898_v54, %v897_v53 }
 0x46e   :  { %v901_v58 = vpack.c.bf16 %v896_v56, %v895_v55 }
 0x470   :  { %2016 = vmatprep.mubr.msk.bf16.mxu1 %vm359_vm4, %v901_v58 }
 0x471   :  { %2017 = vmatmul.mubr.msk.bf16.gmra.mrb[36].mxu1 %vm359_vm4, %v902_v57 }
 0x472   :  { %2028 = vmatprep.mubr.msk.bf16.mxu1 %vm2158_vm0, %v2157_v3 }
 0x53c   :  { %v2014_v60 = vpop.f32.mrb[32].mxu1 }
 0x53d   :  { %v2436_v61 = vadd.f32 %v2014_v60, %v1786_v59  ;;  %v965_v62 = vpop.f32.mrb[33].mxu1 }
 0x53e   :  { %v2438_v63 = vadd.f32 %v1786_v59, %v965_v62  ;;  %v2015_v0 = vpop.f32.mrb[34].mxu1 }
 0x53f   :  { %v2440_v1 = vadd.f32 %v2015_v0, %v1786_v59  ;;  %v968_v2 = vpop.f32.mrb[35].mxu1  ;;  %v998_v5 = vmax.f32 %v2436_v61, 0.0 }
 0x540   :  { %v2442_v4 = vadd.f32 %v1786_v59, %v968_v2  ;;  %v996_v8 = vmax.f32 %v2438_v63, 0.0 }
 0x541   :  { %v999_v6 = vmax.f32 %v2440_v1, 0.0 }
 0x542   :  { %v997_v9 = vmax.f32 %v2442_v4, 0.0 }
 0x543   :  { %v1047_v10 = vpack.c.bf16 %v999_v6, %v998_v5 }
 0x544   :  { %v1004_v11 = vpack.c.bf16 %v997_v9, %v996_v8  ;;  %v2018_v12 = vpop.f32.mrb[36].mxu1 }
 0x545   :  { %v2456_v13 = vadd.f32 %v2018_v12, %v1786_v59  ;;  %v981_v14 = vpop.f32.mrb[37].mxu1  ;;  %2027 = vmatpush3.bf16.msra.mxu1 %v1047_v10  ;;  %v1801_v12 = vld [vmem:[%s2603_s11] ss:$0 sm:$0xff] }
 0x546   :  { %v2458_v15 = vadd.f32 %v1786_v59, %v981_v14  ;;  %v2019_v16 = vpop.f32.mrb[38].mxu1  ;;  %2021 = vmatpush3.bf16.msra.mxu0 %v1004_v11  ;;  %2038 = vmatprep.subr.bf16.mxu1 %v2157_v3 }
 0x547   :  { %v2461_v18 = vadd.f32 %v2019_v16, %v1786_v59  ;;  %v984_v19 = vpop.f32.mrb[39].mxu1  ;;  %2032 = vmatprep.subr.bf16.mxu0 %v2157_v3  ;;  %v1002_v20 = vmax.f32 %v2456_v13, 0.0 }
 0x548   :  { %v2464_v17 = vadd.f32 %v1786_v59, %v984_v19  ;;  %2029 = vmatmul.mubr.msk.bf16.vlgmr.msra.gmra.mrb[40].mxu1 %vm70_vm1, %v2330_v31  ;;  %v1000_v22 = vmax.f32 %v2458_v15, 0.0 }
 0x549   :  { %v1003_v21 = vmax.f32 %v2461_v18, 0.0  ;;  %2023 = vmatmul.mubr.msk.bf16.vlgmr.msra.gmra.mrb[40].mxu0 %vm70_vm1, %v2330_v31  ;;  %2040 = vmatprep.mubr.msk.bf16.mxu1 %vm2158_vm0, %v2157_v3 }
 0x54a   :  { %v1001_v23 = vmax.f32 %v2464_v17, 0.0  ;;  %2034 = vmatprep.mubr.msk.bf16.mxu0 %vm2158_vm0, %v2157_v3 }
 0x54b   :  { %v1133_v24 = vpack.c.bf16 %v1003_v21, %v1002_v20 }
 0x54c   :  { %v1090_v25 = vpack.c.bf16 %v1001_v23, %v1000_v22 }
 0x54d   :  { %2039 = vmatpush3.bf16.msra.mxu1 %v1133_v24 }
 0x54e   :  { %2033 = vmatpush3.bf16.msra.mxu0 %v1090_v25  ;;  %2050 = vmatprep.subr.bf16.mxu1 %v2157_v3 }
 0x54f   :  { %2044 = vmatprep.subr.bf16.mxu0 %v2157_v3 }
 0x550   :  { %2041 = vmatmul.mubr.msk.bf16.vlgmr.msra.gmra.mrb[44].mxu1 %vm70_vm1, %v2330_v31 }
 0x551   :  { %2035 = vmatmul.mubr.msk.bf16.vlgmr.msra.gmra.mrb[44].mxu0 %vm70_vm1, %v2330_v31  ;;  %2051 = vmatpush3.bf16.msra.mxu1 %v1047_v10  ;;  %v2131_v10 = vld [vmem:[%s2600_s8] sm:$0xff]  }
 0x552   :  { %2045 = vmatpush3.bf16.msra.mxu0 %v1004_v11  ;;  %2052 = vmatprep.mubr.msk.bf16.mxu1 %vm2158_vm0, %v2157_v3  ;;  %v2132_v11 = vld [vmem:[%s2600_s8 + $0x8] sm:$0xff]  }
 0x553   :  { %2062 = vmatprep.subr.bf16.mxu1 %v2157_v3  ;;  %2046 = vmatprep.mubr.msk.bf16.mxu0 %vm2158_vm0, %v2157_v3 }
 0x554   :  { %2056 = vmatprep.subr.bf16.mxu0 %v2157_v3 }
 0x558   :  { %2053 = vmatmul.mubr.msk.bf16.vlgmr.msra.gmra.mrb[48].mxu1 %vm70_vm1, %v2248_v7 }
 0x559   :  { %2063 = vmatpush3.bf16.msra.mxu1 %v1133_v24  ;;  %2047 = vmatmul.mubr.msk.bf16.vlgmr.msra.gmra.mrb[48].mxu0 %vm70_vm1, %v2248_v7 }
 0x55a   :  { %2057 = vmatpush3.bf16.msra.mxu0 %v1090_v25  ;;  %2064 = vmatprep.mubr.msk.bf16.mxu1 %vm2158_vm0, %v2157_v3 }
 0x55b   :  { %2058 = vmatprep.mubr.msk.bf16.mxu0 %vm2158_vm0, %v2157_v3  ;;  %2068 = vmatprep.subr.bf16.mxu0 %v2129_v26 }
 0x55c   :  { %2080 = vmatprep.subr.bf16.mxu1 %v2131_v10 }
 0x560   :  { %2065 = vmatmul.mubr.msk.bf16.vlgmr.msra.gmra.mrb[52].mxu1 %vm70_vm1, %v2248_v7 }
 0x561   :  { %2059 = vmatmul.mubr.msk.bf16.vlgmr.msra.gmra.mrb[52].mxu0 %vm70_vm1, %v2248_v7  ;;  %2081 = vmatpush3.bf16.msra.mxu1 %v2131_v10 }
 0x562   :  { %2069 = vmatpush3.bf16.msra.mxu0 %v2129_v26  ;;  %2082 = vmatprep.subr.bf16.mxu1 %v2132_v11 }
 0x563   :  { %2070 = vmatprep.subr.bf16.mxu0 %v2130_v27 }
 0x565   :  { %2083 = vmatpush3.bf16.msra.mxu1 %v2132_v11 }
 0x566   :  { %2071 = vmatpush3.bf16.msra.mxu0 %v2130_v27  ;;  %2098 = vmatprep.subr.bf16.mxu1 %v2157_v3 }
 0x567   :  { %2092 = vmatprep.subr.bf16.mxu0 %v2157_v3 }
 0x61b   :  { %v1082_v28 = vpop.f32.mrb[40].mxu1 }
 0x61c   :  { %1089 = vst.msk [vmem:[#allocation2 + $0x8] sm:$0x3] %vm489_vm5, %v1082_v28  ;;  %v1039_v29 = vpop.f32.mrb[40].mxu0  ;;  %v2030_v30 = vpop.f32.mrb[41].mxu1 }
 0x61d   :  { %1046 = vst.msk [vmem:[#allocation2 + $0x2] sm:$0x3] %vm489_vm5, %v1039_v29  ;;  %v2024_v7 = vpop.f32.mrb[41].mxu0  ;;  %v1085_v32 = vpop.f32.mrb[42].mxu1 }
 0x61e   :  { %v1042_v33 = vpop.f32.mrb[42].mxu0  ;;  %v2031_v34 = vpop.f32.mrb[43].mxu1 }
 0x61f   :  { %v2025_v35 = vpop.f32.mrb[43].mxu0 }
 0x623   :  { %v1168_v36 = vpop.f32.mrb[44].mxu1 }
 0x624   :  { %1175 = vst.msk [vmem:[#allocation2 + $0x14] sm:$0x3] %vm489_vm5, %v1168_v36  ;;  %v1125_v37 = vpop.f32.mrb[44].mxu0  ;;  %v2042_v38 = vpop.f32.mrb[45].mxu1 }
 0x625   :  { %1132 = vst.msk [vmem:[#allocation2 + $0xe] sm:$0x3] %vm489_vm5, %v1125_v37  ;;  %v2036_v39 = vpop.f32.mrb[45].mxu0  ;;  %v1171_v40 = vpop.f32.mrb[46].mxu1 }
 0x626   :  { %v1128_v41 = vpop.f32.mrb[46].mxu0  ;;  %v2043_v42 = vpop.f32.mrb[47].mxu1 }
 0x627   :  { %v2037_v43 = vpop.f32.mrb[47].mxu0  ;;  %v1808_v41 = vld [vmem:[%s2603_s11 + $0x1] ss:$0 sm:$0xff]  ;;  %s2159_s11 = smov [#allocation2]  }
 0x628   :  { %s1737_s25 = sshll.u32 %s2159_s11, 4  ;;  %s1738_s25 = int_to_ptr.vmem [resolvable:$true] %s1737_s25 }
 0x629   :  { %s2133_s6 = scalar_lea.vmem %s1738_s25, 384  ;;  %p2138_p1 = scmp.lt.s32.totalorder %s1738_s25, %s1738_s25 }
 0x62a   :  { %p2134_p0 = scmp.ne.s32.totalorder %s1738_s25, %s2133_s6  ;;  %p2139_p2 = scmp.lt.s32.totalorder %s2133_s6, %s2133_s6 }
 0x62b   :  { %v1261_v44 = vpop.f32.mrb[48].mxu1 }
 0x62c   :  { %v1220_v45 = vpop.f32.mrb[48].mxu0  ;;  %v2054_v46 = vpop.f32.mrb[49].mxu1  ;;  %v1262_v49 = vadd.f32 %v1261_v44, %v998_v5  ;;  %p2140_p3 = por %p2139_p2, %p2138_p1 }
 0x62d   :  { %v2048_v47 = vpop.f32.mrb[49].mxu0  ;;  %v1264_v48 = vpop.f32.mrb[50].mxu1  ;;  %v1221_v53 = vadd.f32 %v1220_v45, %v996_v8 }
 0x62e   :  { %v1265_v50 = vadd.f32 %v1264_v48, %v999_v6  ;;  %v1223_v51 = vpop.f32.mrb[50].mxu0  ;;  %v2055_v52 = vpop.f32.mrb[51].mxu1  ;;  %p2141_p4 = pnand %p2140_p3, %p2134_p0 }
 0x62f   :  { %v1224_v54 = vadd.f32 %v1223_v51, %v997_v9  ;;  %v2049_v55 = vpop.f32.mrb[51].mxu0 }
 0x630   :  { %v1351_v56 = vpack.c.bf16 %v1265_v50, %v1262_v49 }
 0x631   :  { %v1350_v57 = vpack.c.bf16 %v1224_v54, %v1221_v53 }
 0x633   :  { %v1343_v58 = vpop.f32.mrb[52].mxu1  ;;  %2072 = vmatprep.mubr.msk.bf16.mxu0 %vm359_vm4, %v1350_v57 }
 0x634   :  { %v1302_v59 = vpop.f32.mrb[52].mxu0  ;;  %v2066_v60 = vpop.f32.mrb[53].mxu1  ;;  %2073 = vmatmul.mubr.msk.bf16.vlgmr.msra.gmra.mrb[56].mxu0 %vm359_vm4, %v1351_v56  ;;  %v1344_v0 = vadd.f32 %v1343_v58, %v1002_v20 }
 0x635   :  { %v2060_v61 = vpop.f32.mrb[53].mxu0  ;;  %v1346_v62 = vpop.f32.mrb[54].mxu1  ;;  %v1303_v4 = vadd.f32 %v1302_v59, %v1000_v22 }
 0x636   :  { %v1347_v63 = vadd.f32 %v1346_v62, %v1003_v21  ;;  %v1305_v1 = vpop.f32.mrb[54].mxu0  ;;  %v2067_v2 = vpop.f32.mrb[55].mxu1 }
 0x637   :  { %v1306_v5 = vadd.f32 %v1305_v1, %v1001_v23  ;;  %v2061_v6 = vpop.f32.mrb[55].mxu0 }
 0x638   :  { %v1353_v8 = vpack.c.bf16 %v1347_v63, %v1344_v0 }
 0x639   :  { %v1352_v9 = vpack.c.bf16 %v1306_v5, %v1303_v4 }
 0x63b   :  { %2076 = vmatprep.mubr.msk.bf16.mxu0 %vm359_vm4, %v1352_v9 }
 0x63c   :  { %2077 = vmatmul.mubr.msk.bf16.gmra.mrb[60].mxu0 %vm359_vm4, %v1353_v8 }
 0x63d   :  { %2094 = vmatprep.mubr.msk.bf16.mxu0 %vm2158_vm0, %v2157_v3 }
 0x707   :  { %v2074_v13 = vpop.f32.mrb[56].mxu0 }
 0x708   :  { %v1425_v14 = vadd.f32 %v2074_v13, %v1801_v12  ;;  %v1416_v15 = vpop.f32.mrb[57].mxu0 }
 0x709   :  { %v1417_v16 = vadd.f32 %v1801_v12, %v1416_v15  ;;  %v2075_v18 = vpop.f32.mrb[58].mxu0 }
 0x70a   :  { %v1428_v19 = vadd.f32 %v2075_v18, %v1801_v12  ;;  %v1419_v17 = vpop.f32.mrb[59].mxu0  ;;  %v1449_v21 = vmax.f32 %v1425_v14, 0.0 }
 0x70b   :  { %v1420_v20 = vadd.f32 %v1801_v12, %v1419_v17  ;;  %v1447_v23 = vmax.f32 %v1417_v16, 0.0 }
 0x70c   :  { %v1450_v22 = vmax.f32 %v1428_v19, 0.0 }
 0x70d   :  { %v1448_v24 = vmax.f32 %v1420_v20, 0.0 }
 0x70e   :  { %v1456_v25 = vpack.c.bf16 %v1450_v22, %v1449_v21 }
 0x70f   :  { %v1455_v26 = vpack.c.bf16 %v1448_v24, %v1447_v23  ;;  %v2078_v27 = vpop.f32.mrb[60].mxu0 }
 0x710   :  { %v1441_v28 = vadd.f32 %v2078_v27, %v1801_v12  ;;  %v1432_v29 = vpop.f32.mrb[61].mxu0 }
 0x711   :  { %v1433_v30 = vadd.f32 %v1801_v12, %v1432_v29  ;;  %v2079_v7 = vpop.f32.mrb[62].mxu0  ;;  %2084 = vmatprep.mubr.msk.bf16.mxu1 %vm359_vm4, %v1455_v26 }
 0x712   :  { %v1444_v32 = vadd.f32 %v2079_v7, %v1801_v12  ;;  %v1435_v33 = vpop.f32.mrb[63].mxu0  ;;  %2085 = vmatmul.mubr.msk.bf16.vlgmr.msra.gmra.mrb[56].mxu1 %vm359_vm4, %v1456_v25  ;;  %v1453_v35 = vmax.f32 %v1441_v28, 0.0 }
 0x713   :  { %v1436_v34 = vadd.f32 %v1801_v12, %v1435_v33  ;;  %v1451_v37 = vmax.f32 %v1433_v30, 0.0 }
 0x714   :  { %v1454_v36 = vmax.f32 %v1444_v32, 0.0 }
 0x715   :  { %v1452_v38 = vmax.f32 %v1436_v34, 0.0 }
 0x716   :  { %v1458_v39 = vpack.c.bf16 %v1454_v36, %v1453_v35 }
 0x717   :  { %v1457_v40 = vpack.c.bf16 %v1452_v38, %v1451_v37 }
 0x719   :  { %2088 = vmatprep.mubr.msk.bf16.mxu1 %vm359_vm4, %v1457_v40 }
 0x71a   :  { %2089 = vmatmul.mubr.msk.bf16.gmra.mrb[60].mxu1 %vm359_vm4, %v1458_v39 }
 0x71b   :  { %2100 = vmatprep.mubr.msk.bf16.mxu1 %vm2158_vm0, %v2157_v3 }
 0x7e5   :  { %v2086_v42 = vpop.f32.mrb[56].mxu1 }
 0x7e6   :  { %v1530_v43 = vadd.f32 %v2086_v42, %v1808_v41  ;;  %v1521_v44 = vpop.f32.mrb[57].mxu1 }
 0x7e7   :  { %v1522_v45 = vadd.f32 %v1808_v41, %v1521_v44  ;;  %v2087_v46 = vpop.f32.mrb[58].mxu1 }
 0x7e8   :  { %v1533_v47 = vadd.f32 %v2087_v46, %v1808_v41  ;;  %v1524_v48 = vpop.f32.mrb[59].mxu1  ;;  %v1554_v50 = vmax.f32 %v1530_v43, 0.0 }
 0x7e9   :  { %v1525_v49 = vadd.f32 %v1808_v41, %v1524_v48  ;;  %v1552_v52 = vmax.f32 %v1522_v45, 0.0 }
 0x7ea   :  { %v1555_v51 = vmax.f32 %v1533_v47, 0.0 }
 0x7eb   :  { %v1553_v53 = vmax.f32 %v1525_v49, 0.0 }
 0x7ec   :  { %v1603_v54 = vpack.c.bf16 %v1555_v51, %v1554_v50 }
 0x7ed   :  { %v1560_v55 = vpack.c.bf16 %v1553_v53, %v1552_v52  ;;  %v2090_v56 = vpop.f32.mrb[60].mxu1 }
 0x7ee   :  { %v1546_v57 = vadd.f32 %v2090_v56, %v1808_v41  ;;  %v1537_v58 = vpop.f32.mrb[61].mxu1  ;;  %2099 = vmatpush3.bf16.msra.mxu1 %v1603_v54 }
 0x7ef   :  { %v1538_v59 = vadd.f32 %v1808_v41, %v1537_v58  ;;  %v2091_v60 = vpop.f32.mrb[62].mxu1  ;;  %2093 = vmatpush3.bf16.msra.mxu0 %v1560_v55  ;;  %2110 = vmatprep.subr.bf16.mxu1 %v2157_v3 }
 0x7f0   :  { %v1549_v61 = vadd.f32 %v2091_v60, %v1808_v41  ;;  %v1540_v62 = vpop.f32.mrb[63].mxu1  ;;  %2104 = vmatprep.subr.bf16.mxu0 %v2157_v3  ;;  %v1558_v63 = vmax.f32 %v1546_v57, 0.0 }
 0x7f1   :  { %v1541_v0 = vadd.f32 %v1808_v41, %v1540_v62  ;;  %2101 = vmatmul.mubr.msk.bf16.vlgmr.msra.gmra.mrb[64].mxu1 %vm70_vm1, %v2330_v31  ;;  %v1556_v2 = vmax.f32 %v1538_v59, 0.0 }
 0x7f2   :  { %v1559_v1 = vmax.f32 %v1549_v61, 0.0  ;;  %2095 = vmatmul.mubr.msk.bf16.vlgmr.msra.gmra.mrb[64].mxu0 %vm70_vm1, %v2330_v31  ;;  %2112 = vmatprep.mubr.msk.bf16.mxu1 %vm2158_vm0, %v2157_v3 }
 0x7f3   :  { %v1557_v4 = vmax.f32 %v1541_v0, 0.0  ;;  %2106 = vmatprep.mubr.msk.bf16.mxu0 %vm2158_vm0, %v2157_v3 }
 0x7f4   :  { %v1689_v5 = vpack.c.bf16 %v1559_v1, %v1558_v63 }
 0x7f5   :  { %v1646_v6 = vpack.c.bf16 %v1557_v4, %v1556_v2 }
 0x7f6   :  { %2111 = vmatpush3.bf16.msra.mxu1 %v1689_v5 }
 0x7f7   :  { %2105 = vmatpush3.bf16.msra.mxu0 %v1646_v6 }
 0x7f9   :  { %2113 = vmatmul.mubr.msk.bf16.vlgmr.msra.gmra.mrb[68].mxu1 %vm70_vm1, %v2330_v31 }
 0x7fa   :  { %2107 = vmatmul.mubr.msk.bf16.vlgmr.msra.gmra.mrb[68].mxu0 %vm70_vm1, %v2330_v31 }
 0x8c4   :  { %v1638_v8 = vpop.f32.mrb[64].mxu1 }
 0x8c5   :  { %v1595_v9 = vpop.f32.mrb[64].mxu0  ;;  %1645 = vst.msk [vmem:[#allocation2 + $0xa] sm:$0x3] %vm489_vm5, %v1638_v8  ;;  %v2102_v10 = vpop.f32.mrb[65].mxu1 }
 0x8c6   :  { %1602 = vst.msk [vmem:[#allocation2 + $0x4] sm:$0x3] %vm489_vm5, %v1595_v9  ;;  %v2096_v11 = vpop.f32.mrb[65].mxu0  ;;  %v1641_v12 = vpop.f32.mrb[66].mxu1 }
 0x8c7   :  { %v1598_v3 = vpop.f32.mrb[66].mxu0  ;;  %v2103_v13 = vpop.f32.mrb[67].mxu1 }
 0x8c8   :  { %v2097_v14 = vpop.f32.mrb[67].mxu0 }
 0x8cc   :  { %v1724_v15 = vpop.f32.mrb[68].mxu1 }
 0x8cd   :  { %v1681_v16 = vpop.f32.mrb[68].mxu0  ;;  %1731 = vst.msk [vmem:[#allocation2 + $0x16] sm:$0x3] %vm489_vm5, %v1724_v15  ;;  %v2114_v31 = vpop.f32.mrb[69].mxu1 }
 0x8ce   :  { %1688 = vst.msk [vmem:[#allocation2 + $0x10] sm:$0x3] %vm489_vm5, %v1681_v16  ;;  %v2108_v18 = vpop.f32.mrb[69].mxu0  ;;  %v1727_v19 = vpop.f32.mrb[70].mxu1 }
 0x8cf   :  { %v1684_v17 = vpop.f32.mrb[70].mxu0  ;;  %v2115_v20 = vpop.f32.mrb[71].mxu1 }
 0x8d0   :  { %2144 = shalt.err (!%p2141_p4)
}
 0x8d1   :  { %s2145_s27 = scalar_lea.hbm %s2604_s12, 384 }
 0x8d2   :  { %p2146_p5 = scmp.ne.s32.totalorder %s2604_s12, %s2145_s27  ;;  %p2149_p6 = scmp.lt.u32.totalorder %s2145_s27, %s2604_s12 }
 0x8d4   :  { %p2151_p7 = pnand %p2149_p6, %p2146_p5 }
 0x8d6   :  { %2154 = shalt.err (!%p2151_p7)
}
 0x8d7   :  { %s2160_s4 = smov 32   ;;  %s2161_s13 = smov 2   ;;  %v2109_v21 = vpop.f32.mrb[71].mxu0 }
 0x8d8   :  { %1743 = dma.vmem_to_hbm [thread:$0]  %s1738_s25, 384, %s2604_s12, [#allocation3], %s2160_s4, %s2160_s4, %s2161_s13  }
 0x8d9   :  { %2155 = dma.done.wait [#allocation3], 384  }
 0x8da   :  { %2156 = vsyncadd [#allocation3], 4294966912 }
 0x8db   :  { %1747 = vsyncpa [#allocation3], 1 }

</bundles_post_ra>
